<compile_context>
chip_gen: v7x
topology: tpu7x:2x2x1
jax: 0.10.0
libtpu: 0.0.40
codegen_flags: <defaults>
</compile_context>

<pallas_src>
import jax
import jax.numpy as jnp
from jax.experimental import pallas as pl
from jax.experimental.pallas import tpu as pltpu

_HAS_BUFFERED = hasattr(pl, "Buffered")


def _round_up(x, m):
    return ((x + m - 1) // m) * m


def _vmem_capacity_bytes():
    try:
        return int(pltpu.get_tpu_info().vmem_capacity_bytes)
    except Exception:
        return 64 * 1024 * 1024  # conservative (v7x-sized) fallback


# --------------------------------------------------------------------------- #
# Kernel
# --------------------------------------------------------------------------- #
def _bilinear_kernel(xl_ref, xr_ref, s_ref, t_ref, ua_ref, b_ref, o_ref):
    xl = xl_ref[...]                                   # (tb, Lp)  bf16, lane-padded
    xr = xr_ref[...]                                   # (tb, Rp)

    # Lane-dense broadcasts onto the flattened (i*R + j) grid via the MXU
    # (matmul against constant 0/1 matrices): no XLU reshape/relayout.
    #   lhs[b, i*R + j] = xl[b, i]   rhs[b, i*R + j] = xr[b, j]
    lhs = jnp.dot(xl, s_ref[...], preferred_element_type=jnp.float32)   # (tb, LRp)
    rhs = jnp.dot(xr, t_ref[...], preferred_element_type=jnp.float32)   # (tb, LRp)
    z = (lhs * rhs).astype(xl.dtype)                   # products in f32, one bf16 round

    # Fused contraction: bilinear + both linear terms in a single MXU pass.
    # Concat pieces are each a multiple of 128 lanes -> relayout-free concat.
    z_aug = jnp.concatenate([z, xl, xr], axis=1)       # (tb, LRp + Lp + Rp)
    acc = jnp.dot(z_aug, ua_ref[...], preferred_element_type=jnp.float32)  # (tb, Op)

    acc = acc + b_ref[...]                             # (1, Op) f32 broadcast
    o_ref[...] = acc.astype(o_ref.dtype)


# --------------------------------------------------------------------------- #
# One-time parameter re-layout (hoisted out of the forward pass)
# --------------------------------------------------------------------------- #
def prepare_params(U, W_l, W_r, bias=None, *, compute_dtype=jnp.bfloat16,
                   lane_pad=128):
    """Re-layout parameters into the fused kernel layout.

    U    : (O, L, R)  -> rows [0, L*R)       of the weight slab (order i*R + j)
    W_l  : (O, L)     -> rows [LRp, LRp+L)   of the weight slab
    W_r  : (O, R)     -> rows [LRp+Lp, ...)  of the weight slab
    bias : (O,)       -> (1, Op) float32
    Plus two constant 0/1 "broadcast" matrices used to build the outer product
    lane-dense on the MXU.
    """
    O, L, R = U.shape
    assert W_l.shape == (O, L), "W_l shape mismatch"
    # Faithful to the PyTorch module: W_r is declared (out_features, left_features);
    # the forward only type-checks when left_features == right_features.
    assert W_r.shape == (O, R), (
        "W_r is declared (out_features, left_features); the forward only "
        "type-checks when left_features == right_features")

    Op = _round_up(max(O, 1), lane_pad)    # only up to the next 128 (v5e-friendly)
    Lp = _round_up(L, lane_pad)
    Rp = _round_up(R, lane_pad)
    LRp = _round_up(L * R, lane_pad)

    # Broadcast matrices:  S[i, i*R + j] = 1 ,  T[j, i*R + j] = 1
    s_bcast = jnp.kron(jnp.eye(L, dtype=jnp.float32), jnp.ones((1, R), jnp.float32))
    t_bcast = jnp.kron(jnp.ones((1, L), jnp.float32), jnp.eye(R, dtype=jnp.float32))
    s_bcast = jnp.pad(s_bcast, ((0, Lp - L), (0, LRp - L * R))).astype(compute_dtype)
    t_bcast = jnp.pad(t_bcast, ((0, Rp - R), (0, LRp - L * R))).astype(compute_dtype)

    # Fused weight slab: [U_flat ; W_l^T ; W_r^T], zero-padded between segments.
    u_flat = jnp.transpose(U, (1, 2, 0)).reshape(L * R, O)   # row i*R + j -> U[:, i, j]
    u_aug = jnp.zeros((LRp + Lp + Rp, Op), jnp.float32)
    u_aug = u_aug.at[:L * R, :O].set(u_flat)
    u_aug = u_aug.at[LRp:LRp + L, :O].set(jnp.transpose(W_l))
    u_aug = u_aug.at[LRp + Lp:LRp + Lp + R, :O].set(jnp.transpose(W_r))
    u_aug = u_aug.astype(compute_dtype)

    if bias is None:
        bias = jnp.zeros((O,), jnp.float32)
    b_row = jnp.zeros((1, Op), jnp.float32).at[0, :O].set(bias.astype(jnp.float32))

    return dict(s_bcast=s_bcast, t_bcast=t_bcast, u_aug=u_aug, b_row=b_row,
                L=L, R=R, O=O, Lp=Lp, Rp=Rp, LRp=LRp, Op=Op,
                compute_dtype=compute_dtype)


# --------------------------------------------------------------------------- #
# Forward
# --------------------------------------------------------------------------- #
def bilinear_apply(x_left, x_right, params, *, tile_b=512, out_dtype=None):
    """x_left: [..., L], x_right: [..., R] -> [..., out_features]."""
    lead = x_left.shape[:-1]
    assert x_right.shape[:-1] == lead, "batch dims of left/right inputs mismatch"
    L, R, O = params["L"], params["R"], params["O"]
    Lp, Rp, LRp, Op = params["Lp"], params["Rp"], params["LRp"], params["Op"]
    cd = params["compute_dtype"]
    assert x_left.shape[-1] == L and x_right.shape[-1] == R
    if out_dtype is None:
        out_dtype = x_left.dtype      # pass jnp.bfloat16 to halve HBM writeback

    batch = 1
    for d in lead:
        batch *= d
    xl = x_left.reshape(batch, L).astype(cd)
    xr = x_right.reshape(batch, R).astype(cd)

    # ---- VMEM-aware batch-tile selection (no forced splitting into tiny tiles).
    itemsize = jnp.dtype(cd).itemsize
    out_isz = jnp.dtype(out_dtype).itemsize
    pbuf = 1 if _HAS_BUFFERED else 2                     # param buffering factor
    param_bytes = pbuf * ((Lp + Rp) * LRp * itemsize
                          + (LRp + Lp + Rp) * Op * itemsize
                          + Op * 4)
    cap = _vmem_capacity_bytes()
    budget = int(0.6 * cap)                              # ~40 MiB usable on v7x

    def _estimate(tb):
        io = 2 * tb * ((Lp + Rp) * itemsize + Op * out_isz)        # double-buffered IO
        interm = tb * (2 * LRp * 4                                  # lhs/rhs f32
                       + LRp * itemsize                             # z
                       + (LRp + Lp + Rp) * itemsize                 # z_aug
                       + Op * 4)                                    # acc
        return param_bytes + io + interm

    batch8 = _round_up(max(batch, 8), 8)
    tb = max(8, _round_up(min(tile_b, batch8), 8))
    while tb > 8 and _estimate(tb) > budget:
        tb = max(8, _round_up(tb // 2, 8))
    # TODO(synk): if the single-buffered parameters alone exceed the budget
    # (very large L*R on v7x's 64 MiB VMEM), add a K-reduction grid axis over
    # LRp (tile u_aug rows, f32 accumulator scratch, pl.when init/finalize)
    # instead of failing here.  Not needed at these feature sizes.
    if _estimate(tb) > budget:
        raise ValueError("BiLinear parameters too large for VMEM; K-tiling not implemented")

    padded = _round_up(batch8, tb)
    xl = jnp.pad(xl, ((0, padded - batch), (0, Lp - L)))
    xr = jnp.pad(xr, ((0, padded - batch), (0, Rp - R)))
    grid = (padded // tb,)

    vmem_limit = int(min(int(0.9 * cap), max(32 * 1024 * 1024, 2 * _estimate(tb))))

    def _make_call(use_buffered):
        def param_spec(shape):
            # Constant index_map across the grid -> single buffering is safe.
            if use_buffered:
                return pl.BlockSpec(shape, lambda b: (0, 0),
                                    pipeline_mode=pl.Buffered(1))
            return pl.BlockSpec(shape, lambda b: (0, 0))

        return pl.pallas_call(
            _bilinear_kernel,
            out_shape=jax.ShapeDtypeStruct((padded, Op), out_dtype),
            grid_spec=pltpu.PrefetchScalarGridSpec(
                num_scalar_prefetch=0,
                grid=grid,
                in_specs=[
                    pl.BlockSpec((tb, Lp), lambda b: (b, 0)),
                    pl.BlockSpec((tb, Rp), lambda b: (b, 0)),
                    param_spec((Lp, LRp)),
                    param_spec((Rp, LRp)),
                    param_spec((LRp + Lp + Rp, Op)),
                    param_spec((1, Op)),
                ],
                out_specs=pl.BlockSpec((tb, Op), lambda b: (b, 0)),
            ),
            compiler_params=pltpu.CompilerParams(
                dimension_semantics=("parallel",),
                vmem_limit_bytes=vmem_limit,
            ),
        )

    args = (xl, xr, params["s_bcast"], params["t_bcast"],
            params["u_aug"], params["b_row"])
    if _HAS_BUFFERED:
        try:
            out = _make_call(True)(*args)
        except Exception:
            out = _make_call(False)(*args)      # defensive fallback: double-buffer params
    else:
        out = _make_call(False)(*args)

    # Padded batch rows / padded O lanes are garbage and MUST be sliced off.
    return out[:batch, :O].reshape(lead + (O,))


def _xavier_uniform(key, shape, fan_in, fan_out, dtype=jnp.float32):
    bound = (6.0 / (fan_in + fan_out)) ** 0.5
    return jax.random.uniform(key, shape, dtype, minval=-bound, maxval=bound)


# --------------------------------------------------------------------------- #
# Demo / self-test
# --------------------------------------------------------------------------- #
if __name__ == "__main__":
    # Module config: left_features == right_features (required by the module's
    # W_r declaration), out_features = 32.
    left_features = 32
    right_features = 32
    out_features = 32

    key = jax.random.PRNGKey(0)
    k_u, k_wl, k_wr, k_xl, k_xr = jax.random.split(key, 5)

    U = _xavier_uniform(k_u, (out_features, left_features, right_features),
                        fan_in=left_features * right_features, fan_out=out_features)
    W_l = _xavier_uniform(k_wl, (out_features, left_features),
                          fan_in=left_features, fan_out=out_features)
    W_r = _xavier_uniform(k_wr, (out_features, left_features),
                          fan_in=left_features, fan_out=out_features)
    bias = jnp.zeros((out_features,), jnp.float32)

    # One-time parameter re-layout (kept outside the per-call forward).
    params = prepare_params(U, W_l, W_r, bias)

    # Inputs: [batch1, batch2, features]
    batch1, batch2 = 2, 8
    x_left = jax.random.normal(k_xl, (batch1, batch2, left_features), jnp.float32)
    x_right = jax.random.normal(k_xr, (batch1, batch2, right_features), jnp.float32)

    out = bilinear_apply(x_left, x_right, params)
    out = jax.block_until_ready(out)
    assert out.shape == (batch1, batch2, out_features)

    # --- Check 1 (tight): same decomposition / same bf16 operands, f32 accumulation.
    batch = batch1 * batch2
    cd = params["compute_dtype"]
    L, R, O = left_features, right_features, out_features
    LRp, Lp = params["LRp"], params["Lp"]
    xl_b = x_left.reshape(batch, L).astype(cd)
    xr_b = x_right.reshape(batch, R).astype(cd)
    z_b = (xl_b.astype(jnp.float32)[:, :, None]
           * xr_b.astype(jnp.float32)[:, None, :]).reshape(batch, L * R).astype(cd)
    u_aug = params["u_aug"]
    u_bil = u_aug[:L * R]
    wl_t = u_aug[LRp:LRp + L]
    wr_t = u_aug[LRp + Lp:LRp + Lp + R]
    ref_tight = (jnp.dot(z_b, u_bil, preferred_element_type=jnp.float32)
                 + jnp.dot(xl_b, wl_t, preferred_element_type=jnp.float32)
                 + jnp.dot(xr_b, wr_t, preferred_element_type=jnp.float32)
                 + params["b_row"])[:, :O]
    ref_tight = ref_tight.astype(out.dtype).reshape(batch1, batch2, O)
    assert jnp.allclose(out, ref_tight, atol=2e-3, rtol=2e-3), \
        "mismatch vs bf16-consistent reference"

    # --- Check 2 (loose): semantics vs the original f32 parameters / inputs
    # (difference is only the bf16 compute cast; accumulation stays f32).
    hi = jax.lax.Precision.HIGHEST
    ref_f32 = (jnp.einsum("bsl,olr,bsr->bso", x_left, U, x_right, precision=hi)
               + jnp.einsum("bsl,ol->bso", x_left, W_l, precision=hi)
               + jnp.einsum("bsr,or->bso", x_right, W_r, precision=hi)
               + bias)
    assert jnp.allclose(out, ref_f32, atol=5e-2, rtol=5e-2), \
        "mismatch vs f32 semantic reference"

    print("KERNEL_OK")
</pallas_src>

<mosaic_0001>
module attributes {stable_mosaic.version = 11 : i64} {
  func.func @_bilinear_kernel(%arg0: i32, %arg1: memref<16x128xbf16, #tpu.memory_space<vmem>>, %arg2: memref<16x128xbf16, #tpu.memory_space<vmem>>, %arg3: memref<128x1024xbf16, #tpu.memory_space<vmem>>, %arg4: memref<128x1024xbf16, #tpu.memory_space<vmem>>, %arg5: memref<1280x128xbf16, #tpu.memory_space<vmem>>, %arg6: memref<1x128xf32, #tpu.memory_space<vmem>>, %arg7: memref<16x128xf32, #tpu.memory_space<vmem>>) attributes {dimension_semantics = [#tpu.dimension_semantics<parallel>], iteration_bounds = array<i64: 1>, scalar_prefetch = 0 : i64, scratch_operands = 0 : i64, tpu.core_type = #tpu.core_type<tc>, window_params = [{transform_indices = @transform_0, window_bounds = array<i64: 16, 128>}, {transform_indices = @transform_1, window_bounds = array<i64: 16, 128>}, {pipeline_mode = #tpu.pipeline_mode<synchronous>, transform_indices = @transform_2, window_bounds = array<i64: 128, 1024>}, {pipeline_mode = #tpu.pipeline_mode<synchronous>, transform_indices = @transform_3, window_bounds = array<i64: 128, 1024>}, {pipeline_mode = #tpu.pipeline_mode<synchronous>, transform_indices = @transform_4, window_bounds = array<i64: 1280, 128>}, {pipeline_mode = #tpu.pipeline_mode<synchronous>, transform_indices = @transform_5, window_bounds = array<i64: 1, 128>}, {transform_indices = @transform_6, window_bounds = array<i64: 16, 128>}]} {
    %c0 = arith.constant 0 : index
    %c0_0 = arith.constant 0 : index
    %0 = vector.load %arg1[%c0, %c0_0] : memref<16x128xbf16, #tpu.memory_space<vmem>>, vector<16x128xbf16>
    %c0_1 = arith.constant 0 : index
    %c0_2 = arith.constant 0 : index
    %1 = vector.load %arg2[%c0_1, %c0_2] : memref<16x128xbf16, #tpu.memory_space<vmem>>, vector<16x128xbf16>
    %c0_3 = arith.constant 0 : index
    %c0_4 = arith.constant 0 : index
    %2 = vector.load %arg3[%c0_3, %c0_4] : memref<128x1024xbf16, #tpu.memory_space<vmem>>, vector<128x1024xbf16>
    %cst = arith.constant dense<0.000000e+00> : vector<16x1024xf32>
    %3 = tpu.matmul %0, %2, %cst {dimension_numbers = #tpu.dot_dimension_numbers<[1], [0], [0], [1], [0, 0, 1, 1], [], []>} : vector<16x128xbf16>, vector<128x1024xbf16>, vector<16x1024xf32> -> vector<16x1024xf32>
    %c0_5 = arith.constant 0 : index
    %c0_6 = arith.constant 0 : index
    %4 = vector.load %arg4[%c0_5, %c0_6] : memref<128x1024xbf16, #tpu.memory_space<vmem>>, vector<128x1024xbf16>
    %cst_7 = arith.constant dense<0.000000e+00> : vector<16x1024xf32>
    %5 = tpu.matmul %1, %4, %cst_7 {dimension_numbers = #tpu.dot_dimension_numbers<[1], [0], [0], [1], [0, 0, 1, 1], [], []>} : vector<16x128xbf16>, vector<128x1024xbf16>, vector<16x1024xf32> -> vector<16x1024xf32>
    %6 = arith.mulf %3, %5 : vector<16x1024xf32>
    %7 = arith.truncf %6 : vector<16x1024xf32> to vector<16x1024xbf16>
    %8 = tpu.concatenate %7, %0, %1 in 1 : vector<16x1024xbf16>, vector<16x128xbf16>, vector<16x128xbf16> -> vector<16x1280xbf16>
    %c0_8 = arith.constant 0 : index
    %c0_9 = arith.constant 0 : index
    %9 = vector.load %arg5[%c0_8, %c0_9] : memref<1280x128xbf16, #tpu.memory_space<vmem>>, vector<1280x128xbf16>
    %cst_10 = arith.constant dense<0.000000e+00> : vector<16x128xf32>
    %10 = tpu.matmul %8, %9, %cst_10 {dimension_numbers = #tpu.dot_dimension_numbers<[1], [0], [0], [1], [0, 0, 1, 1], [], []>} : vector<16x1280xbf16>, vector<1280x128xbf16>, vector<16x128xf32> -> vector<16x128xf32>
    %c0_11 = arith.constant 0 : index
    %c0_12 = arith.constant 0 : index
    %11 = vector.load %arg6[%c0_11, %c0_12] : memref<1x128xf32, #tpu.memory_space<vmem>>, vector<1x128xf32>
    %12 = vector.broadcast %11 : vector<1x128xf32> to vector<16x128xf32>
    %13 = arith.addf %10, %12 : vector<16x128xf32>
    %c0_13 = arith.constant 0 : index
    %c0_14 = arith.constant 0 : index
    %14 = vector.load %arg7[%c0_13, %c0_14] : memref<16x128xf32, #tpu.memory_space<vmem>>, vector<16x128xf32>
    tpu.vector_store %arg7[%c0_13, %c0_14], %13 {strides = array<i32>} : memref<16x128xf32, #tpu.memory_space<vmem>>, vector<16x128xf32>,
    return
  }
  func.func @transform_0(%arg0: i32) -> (i32, i32) {
    %c0_i32 = arith.constant 0 : i32
    %c0_i32_0 = arith.constant 0 : i32
    return %arg0, %c0_i32 : i32, i32
  }
  func.func @transform_1(%arg0: i32) -> (i32, i32) {
    %c0_i32 = arith.constant 0 : i32
    %c0_i32_0 = arith.constant 0 : i32
    return %arg0, %c0_i32 : i32, i32
  }
  func.func @transform_2(%arg0: i32) -> (i32, i32) {
    %c0_i32 = arith.constant 0 : i32
    %c0_i32_0 = arith.constant 0 : i32
    %c0_i32_1 = arith.constant 0 : i32
    return %c0_i32, %c0_i32_0 : i32, i32
  }
  func.func @transform_3(%arg0: i32) -> (i32, i32) {
    %c0_i32 = arith.constant 0 : i32
    %c0_i32_0 = arith.constant 0 : i32
    %c0_i32_1 = arith.constant 0 : i32
    return %c0_i32, %c0_i32_0 : i32, i32
  }
  func.func @transform_4(%arg0: i32) -> (i32, i32) {
    %c0_i32 = arith.constant 0 : i32
    %c0_i32_0 = arith.constant 0 : i32
    %c0_i32_1 = arith.constant 0 : i32
    return %c0_i32, %c0_i32_0 : i32, i32
  }
  func.func @transform_5(%arg0: i32) -> (i32, i32) {
    %c0_i32 = arith.constant 0 : i32
    %c0_i32_0 = arith.constant 0 : i32
    %c0_i32_1 = arith.constant 0 : i32
    return %c0_i32, %c0_i32_0 : i32, i32
  }
  func.func @transform_6(%arg0: i32) -> (i32, i32) {
    %c0_i32 = arith.constant 0 : i32
    %c0_i32_0 = arith.constant 0 : i32
    return %arg0, %c0_i32 : i32, i32
  }
}

module attributes {stable_mosaic.version = 11 : i64} {
  func.func @_bilinear_kernel(%arg0: i32, %arg1: memref<16x128xbf16, #tpu.memory_space<vmem>>, %arg2: memref<16x128xbf16, #tpu.memory_space<vmem>>, %arg3: memref<128x1024xbf16, #tpu.memory_space<vmem>>, %arg4: memref<128x1024xbf16, #tpu.memory_space<vmem>>, %arg5: memref<1280x128xbf16, #tpu.memory_space<vmem>>, %arg6: memref<1x128xf32, #tpu.memory_space<vmem>>, %arg7: memref<16x128xf32, #tpu.memory_space<vmem>>) attributes {dimension_semantics = [#tpu.dimension_semantics<parallel>], iteration_bounds = array<i64: 1>, scalar_prefetch = 0 : i64, scratch_operands = 0 : i64, tpu.core_type = #tpu.core_type<tc>, window_params = [{transform_indices = @transform_0, window_bounds = array<i64: 16, 128>}, {transform_indices = @transform_1, window_bounds = array<i64: 16, 128>}, {pipeline_mode = #tpu.pipeline_mode<synchronous>, transform_indices = @transform_2, window_bounds = array<i64: 128, 1024>}, {pipeline_mode = #tpu.pipeline_mode<synchronous>, transform_indices = @transform_3, window_bounds = array<i64: 128, 1024>}, {pipeline_mode = #tpu.pipeline_mode<synchronous>, transform_indices = @transform_4, window_bounds = array<i64: 1280, 128>}, {pipeline_mode = #tpu.pipeline_mode<synchronous>, transform_indices = @transform_5, window_bounds = array<i64: 1, 128>}, {transform_indices = @transform_6, window_bounds = array<i64: 16, 128>}]} {
    %c0 = arith.constant 0 : index
    %c0_0 = arith.constant 0 : index
    %0 = vector.load %arg1[%c0, %c0_0] : memref<16x128xbf16, #tpu.memory_space<vmem>>, vector<16x128xbf16>
    %c0_1 = arith.constant 0 : index
    %c0_2 = arith.constant 0 : index
    %1 = vector.load %arg2[%c0_1, %c0_2] : memref<16x128xbf16, #tpu.memory_space<vmem>>, vector<16x128xbf16>
    %c0_3 = arith.constant 0 : index
    %c0_4 = arith.constant 0 : index
    %2 = vector.load %arg3[%c0_3, %c0_4] : memref<128x1024xbf16, #tpu.memory_space<vmem>>, vector<128x1024xbf16>
    %cst = arith.constant dense<0.000000e+00> : vector<16x1024xf32>
    %3 = tpu.matmul %0, %2, %cst {dimension_numbers = #tpu.dot_dimension_numbers<[1], [0], [0], [1], [0, 0, 1, 1], [], []>} : vector<16x128xbf16>, vector<128x1024xbf16>, vector<16x1024xf32> -> vector<16x1024xf32>
    %c0_5 = arith.constant 0 : index
    %c0_6 = arith.constant 0 : index
    %4 = vector.load %arg4[%c0_5, %c0_6] : memref<128x1024xbf16, #tpu.memory_space<vmem>>, vector<128x1024xbf16>
    %cst_7 = arith.constant dense<0.000000e+00> : vector<16x1024xf32>
    %5 = tpu.matmul %1, %4, %cst_7 {dimension_numbers = #tpu.dot_dimension_numbers<[1], [0], [0], [1], [0, 0, 1, 1], [], []>} : vector<16x128xbf16>, vector<128x1024xbf16>, vector<16x1024xf32> -> vector<16x1024xf32>
    %6 = arith.mulf %3, %5 : vector<16x1024xf32>
    %7 = arith.truncf %6 : vector<16x1024xf32> to vector<16x1024xbf16>
    %8 = tpu.concatenate %7, %0, %1 in 1 : vector<16x1024xbf16>, vector<16x128xbf16>, vector<16x128xbf16> -> vector<16x1280xbf16>
    %c0_8 = arith.constant 0 : index
    %c0_9 = arith.constant 0 : index
    %9 = vector.load %arg5[%c0_8, %c0_9] : memref<1280x128xbf16, #tpu.memory_space<vmem>>, vector<1280x128xbf16>
    %cst_10 = arith.constant dense<0.000000e+00> : vector<16x128xf32>
    %10 = tpu.matmul %8, %9, %cst_10 {dimension_numbers = #tpu.dot_dimension_numbers<[1], [0], [0], [1], [0, 0, 1, 1], [], []>} : vector<16x1280xbf16>, vector<1280x128xbf16>, vector<16x128xf32> -> vector<16x128xf32>
    %c0_11 = arith.constant 0 : index
    %c0_12 = arith.constant 0 : index
    %11 = vector.load %arg6[%c0_11, %c0_12] : memref<1x128xf32, #tpu.memory_space<vmem>>, vector<1x128xf32>
    %12 = vector.broadcast %11 : vector<1x128xf32> to vector<16x128xf32>
    %13 = arith.addf %10, %12 : vector<16x128xf32>
    %c0_13 = arith.constant 0 : index
    %c0_14 = arith.constant 0 : index
    %14 = vector.load %arg7[%c0_13, %c0_14] : memref<16x128xf32, #tpu.memory_space<vmem>>, vector<16x128xf32>
    tpu.vector_store %arg7[%c0_13, %c0_14], %13 {strides = array<i32>} : memref<16x128xf32, #tpu.memory_space<vmem>>, vector<16x128xf32>,
    return
  }
  func.func @transform_0(%arg0: i32) -> (i32, i32) {
    %c0_i32 = arith.constant 0 : i32
    %c0_i32_0 = arith.constant 0 : i32
    return %arg0, %c0_i32 : i32, i32
  }
  func.func @transform_1(%arg0: i32) -> (i32, i32) {
    %c0_i32 = arith.constant 0 : i32
    %c0_i32_0 = arith.constant 0 : i32
    return %arg0, %c0_i32 : i32, i32
  }
  func.func @transform_2(%arg0: i32) -> (i32, i32) {
    %c0_i32 = arith.constant 0 : i32
    %c0_i32_0 = arith.constant 0 : i32
    %c0_i32_1 = arith.constant 0 : i32
    return %c0_i32, %c0_i32_0 : i32, i32
  }
  func.func @transform_3(%arg0: i32) -> (i32, i32) {
    %c0_i32 = arith.constant 0 : i32
    %c0_i32_0 = arith.constant 0 : i32
    %c0_i32_1 = arith.constant 0 : i32
    return %c0_i32, %c0_i32_0 : i32, i32
  }
  func.func @transform_4(%arg0: i32) -> (i32, i32) {
    %c0_i32 = arith.constant 0 : i32
    %c0_i32_0 = arith.constant 0 : i32
    %c0_i32_1 = arith.constant 0 : i32
    return %c0_i32, %c0_i32_0 : i32, i32
  }
  func.func @transform_5(%arg0: i32) -> (i32, i32) {
    %c0_i32 = arith.constant 0 : i32
    %c0_i32_0 = arith.constant 0 : i32
    %c0_i32_1 = arith.constant 0 : i32
    return %c0_i32, %c0_i32_0 : i32, i32
  }
  func.func @transform_6(%arg0: i32) -> (i32, i32) {
    %c0_i32 = arith.constant 0 : i32
    %c0_i32_0 = arith.constant 0 : i32
    return %arg0, %c0_i32 : i32, i32
  }
}

</mosaic_0001>

<bundles_post_ra>
// kernel: tpu_custom_call.1
= control target key start
LH: loop header
LB: loop body
LE: loop exit
PB: predicated region body
PF: predicated region fallthrough
CT: control target
= control target key end

     0   :  { %11 = vsyncpa [#allocation3], 0  ;;  %s2858_s0 = inlined_call_operand.hbm [shape: bf16[16,128], index: 0, kind: input, shape index: {}]   ;;  %s2859_s1 = inlined_call_operand.hbm [shape: bf16[16,128], index: 1, kind: input, shape index: {}]   ;;  %s2860_s2 = inlined_call_operand.hbm [shape: bf16[128,1024], index: 2, kind: input, shape index: {}]   ;;  %s2861_s3 = inlined_call_operand.hbm [shape: bf16[128,1024], index: 3, kind: input, shape index: {}]   ;;  %s2862_s4 = inlined_call_operand.hbm [shape: bf16[1280,128], index: 4, kind: input, shape index: {}]   ;;  %s2863_s5 = inlined_call_operand.vmem [shape: f32[1,128], index: 5, kind: input, shape index: {}]   ;;  %s2864_s6 = inlined_call_operand.hbm [shape: f32[16,128], index: 6, kind: output, shape index: {}]  }
   0x1   :  { %12 = vsyncpa [#allocation6], 0 }
   0x2   :  { %13 = vsyncpa [#allocation9], 0 }
   0x3   :  { %14 = vsyncpa [#allocation4], 0  ;;  %s2675_s21 = smov [#allocation5]   ;;  %s2535_s25 = scalar_lea.hbm %s2859_s1, 128 }
   0x4   :  { %s32_s22 = sshll.u32 %s2675_s21, 4  ;;  %p2536_p0 = scmp.ne.s32.totalorder %s2859_s1, %s2535_s25  ;;  %s33_s22 = int_to_ptr.vmem [resolvable:$true] %s32_s22 }
   0x5   :  { %p2539_p1 = scmp.lt.u32.totalorder %s2535_s25, %s2859_s1 }
   0x7   :  { %p2541_p2 = pnand %p2539_p1, %p2536_p0 }
   0x9   :  { %2544 = shalt.err (!%p2541_p2)
}
   0xa   :  { %s2545_s30 = scalar_lea.vmem %s33_s22, 128  ;;  %p2550_p4 = scmp.lt.s32.totalorder %s33_s22, %s33_s22 }
   0xb   :  { %p2546_p3 = scmp.ne.s32.totalorder %s33_s22, %s2545_s30  ;;  %p2551_p5 = scmp.lt.s32.totalorder %s2545_s30, %s2545_s30 }
   0xd   :  { %p2552_p6 = por %p2551_p5, %p2550_p4 }
   0xf   :  { %p2553_p7 = pnand %p2552_p6, %p2546_p3 }
  0x11   :  { %2556 = shalt.err (!%p2553_p7)
}
  0x12   :  { %s2676_s7 = smov 64   ;;  %s2677_s8 = smov 4  }
  0x13   :  { %38 = dma.hbm_to_vmem [thread:$0]  %s2859_s1, 128, %s33_s22, [#allocation6], %s2676_s7, %s2676_s7, %s2677_s8  }
  0x14   :  { %s2678_s11 = smov [#allocation8]   ;;  %s2679_s13 = smov [#allocation2]  }
  0x15   :  { %s56_s12 = sshll.u32 %s2678_s11, 4  ;;  %s20_s14 = sshll.u32 %s2679_s13, 4  ;;  %s57_s12 = int_to_ptr.vmem [resolvable:$true] %s56_s12  ;;  %s21_s14 = int_to_ptr.vmem [resolvable:$true] %s20_s14 }
  0x16   :  { %s2557_s17 = scalar_lea.hbm %s2861_s3, 8192 }
  0x17   :  { %p2558_p8 = scmp.ne.s32.totalorder %s2861_s3, %s2557_s17  ;;  %p2561_p9 = scmp.lt.u32.totalorder %s2557_s17, %s2861_s3 }
  0x19   :  { %p2563_p10 = pnand %p2561_p9, %p2558_p8 }
  0x1b   :  { %2566 = shalt.err (!%p2563_p10)
}
  0x1c   :  { %s2567_s1 = scalar_lea.vmem %s57_s12, 8192  ;;  %p2572_p12 = scmp.lt.s32.totalorder %s57_s12, %s57_s12 }
  0x1d   :  { %p2568_p11 = scmp.ne.s32.totalorder %s57_s12, %s2567_s1  ;;  %p2573_p13 = scmp.lt.s32.totalorder %s2567_s1, %s2567_s1 }
  0x1f   :  { %p2574_p0 = por %p2573_p13, %p2572_p12 }
  0x21   :  { %p2575_p1 = pnand %p2574_p0, %p2568_p11 }
  0x23   :  { %2578 = shalt.err (!%p2575_p1)
}
  0x24   :  { %s2680_s22 = smov 512   ;;  %s2681_s23 = smov 32  }
  0x25   :  { %62 = dma.hbm_to_vmem [thread:$0]  %s2861_s3, 8192, %s57_s12, [#allocation9], %s2680_s22, %s2680_s22, %s2681_s23  }
  0x26   :  { %s2579_s28 = scalar_lea.hbm %s2858_s0, 128 }
  0x27   :  { %p2580_p2 = scmp.ne.s32.totalorder %s2858_s0, %s2579_s28  ;;  %p2583_p3 = scmp.lt.u32.totalorder %s2579_s28, %s2858_s0 }
  0x29   :  { %p2585_p4 = pnand %p2583_p3, %p2580_p2 }
  0x2b   :  { %2588 = shalt.err (!%p2585_p4)
}
  0x2c   :  { %s2589_s11 = scalar_lea.vmem %s21_s14, 128  ;;  %p2594_p6 = scmp.lt.s32.totalorder %s21_s14, %s21_s14 }
  0x2d   :  { %p2590_p5 = scmp.ne.s32.totalorder %s21_s14, %s2589_s11  ;;  %p2595_p7 = scmp.lt.s32.totalorder %s2589_s11, %s2589_s11 }
  0x2f   :  { %p2596_p8 = por %p2595_p7, %p2594_p6 }
  0x31   :  { %p2597_p9 = pnand %p2596_p8, %p2590_p5 }
  0x33   :  { %2600 = shalt.err (!%p2597_p9)
}
  0x34   :  { %26 = dma.hbm_to_vmem [thread:$0]  %s2858_s0, 128, %s21_s14, [#allocation3], %s2676_s7, %s2676_s7, %s2677_s8  }
  0x35   :  { %s2682_s13 = smov [#allocation7]   ;;  %s2683_s16 = smov [#allocation10]  }
  0x36   :  { %s44_s15 = sshll.u32 %s2682_s13, 4  ;;  %s68_s17 = sshll.u32 %s2683_s16, 4  ;;  %s45_s15 = int_to_ptr.vmem [resolvable:$true] %s44_s15  ;;  %s69_s17 = int_to_ptr.vmem [resolvable:$true] %s68_s17 }
  0x37   :  { %s2601_s20 = scalar_lea.hbm %s2860_s2, 8192 }
  0x38   :  { %p2602_p10 = scmp.ne.s32.totalorder %s2860_s2, %s2601_s20  ;;  %p2605_p11 = scmp.lt.u32.totalorder %s2601_s20, %s2860_s2 }
  0x3a   :  { %p2607_p12 = pnand %p2605_p11, %p2602_p10 }
  0x3c   :  { %2610 = shalt.err (!%p2607_p12)
}
  0x3d   :  { %s2611_s0 = scalar_lea.vmem %s45_s15, 8192  ;;  %p2616_p0 = scmp.lt.s32.totalorder %s45_s15, %s45_s15 }
  0x3e   :  { %p2612_p13 = scmp.ne.s32.totalorder %s45_s15, %s2611_s0  ;;  %p2617_p1 = scmp.lt.s32.totalorder %s2611_s0, %s2611_s0 }
  0x40   :  { %p2618_p2 = por %p2617_p1, %p2616_p0 }
  0x42   :  { %p2619_p3 = pnand %p2618_p2, %p2612_p13 }
  0x44   :  { %2622 = shalt.err (!%p2619_p3)
}
  0x45   :  { %50 = dma.hbm_to_vmem [thread:$0]  %s2860_s2, 8192, %s45_s15, [#allocation6], %s2680_s22, %s2680_s22, %s2681_s23  }
  0x46   :  { %s2623_s29 = scalar_lea.hbm %s2862_s4, 10240 }
  0x47   :  { %p2624_p4 = scmp.ne.s32.totalorder %s2862_s4, %s2623_s29  ;;  %p2627_p5 = scmp.lt.u32.totalorder %s2623_s29, %s2862_s4 }
  0x49   :  { %p2629_p6 = pnand %p2627_p5, %p2624_p4 }
  0x4b   :  { %2632 = shalt.err (!%p2629_p6)
}
  0x4c   :  { %s2633_s3 = scalar_lea.vmem %s69_s17, 10240  ;;  %p2638_p8 = scmp.lt.s32.totalorder %s69_s17, %s69_s17 }
  0x4d   :  { %p2634_p7 = scmp.ne.s32.totalorder %s69_s17, %s2633_s3  ;;  %p2639_p9 = scmp.lt.s32.totalorder %s2633_s3, %s2633_s3 }
  0x4f   :  { %p2640_p10 = por %p2639_p9, %p2638_p8 }
  0x51   :  { %p2641_p11 = pnand %p2640_p10, %p2634_p7 }
  0x53   :  { %2644 = shalt.err (!%p2641_p11)
}
  0x54   :  { %74 = dma.hbm_to_vmem [thread:$0]  %s2862_s4, 10240, %s69_s17, [#allocation9], %s2676_s7, %s2676_s7, %s2677_s8  }
  0x55   :  { %2667 = dma.done.wait [#allocation3], 128  }
  0x56   :  { %2668 = vsyncadd [#allocation3], 4294967168 }
  0x57   :  { %2669 = dma.done.wait [#allocation6], 8320  }
  0x58   :  { %2670 = vsyncadd [#allocation6], 4294958976 }
  0x59   :  { %2671 = dma.done.wait [#allocation9], 18432  }
  0x5a   :  { %2672 = vsyncadd [#allocation9], 4294948864  ;;  %v2684_v0 = vmov 0   ;;  %v97_v1 = vld [vmem:[#allocation7] sm:$0xff]  ;;  %v98_v3 = vld [vmem:[#allocation7 + $0x8] sm:$0xff] }
  0x5b   :  { %519 = vmatprep.mubr.bf16.mxu0 %v2684_v0  ;;  %562 = vmatprep.mubr.bf16.mxu1 %v2684_v0  ;;  %v101_v2 = vld [vmem:[#allocation7 + $0x20] sm:$0xff]  ;;  %v102_v5 = vld [vmem:[#allocation7 + $0x28] sm:$0xff]  ;;  %v99_v63 = vld [vmem:[#allocation7 + $0x10] sm:$0xff] }
  0x5c   :  { %v2120_v4 = vcombine.high %v97_v1, %v101_v2  ;;  %v2119_v6 = vcombine.low %v97_v1, %v101_v2  ;;  %v105_v7 = vld [vmem:[#allocation7 + $0x40] sm:$0xff]  ;;  %v2122_v9 = vcombine.high %v98_v3, %v102_v5  ;;  %v2121_v10 = vcombine.low %v98_v3, %v102_v5  ;;  %v106_v12 = vld [vmem:[#allocation7 + $0x48] sm:$0xff]  ;;  %v103_v1 = vld [vmem:[#allocation7 + $0x30] sm:$0xff] }
  0x5d   :  { %v109_v8 = vld [vmem:[#allocation7 + $0x60] sm:$0xff]  ;;  %v110_v13 = vld [vmem:[#allocation7 + $0x68] sm:$0xff]  ;;  %v100_v2 = vld [vmem:[#allocation7 + $0x18] sm:$0xff] }
  0x5e   :  { %v2128_v11 = vcombine.high %v105_v7, %v109_v8  ;;  %v113_v14 = vld [vmem:[#allocation7 + $0x80] sm:$0xff]  ;;  %487 = vmatprep.subr.bf16.mxu0 %v2120_v4  ;;  %v2130_v15 = vcombine.high %v106_v12, %v110_v13  ;;  %v114_v17 = vld [vmem:[#allocation7 + $0x88] sm:$0xff]  ;;  %530 = vmatprep.subr.bf16.mxu1 %v2122_v9  ;;  %v2127_v19 = vcombine.low %v105_v7, %v109_v8  ;;  %v104_v3 = vld [vmem:[#allocation7 + $0x38] sm:$0xff] }
  0x5f   :  { %v117_v16 = vld [vmem:[#allocation7 + $0xa0] sm:$0xff]  ;;  %v118_v18 = vld [vmem:[#allocation7 + $0xa8] sm:$0xff]  ;;  %488 = vmatpush1.bf16.msra.mxu0 %v2119_v6  ;;  %531 = vmatpush1.bf16.msra.mxu1 %v2121_v10  ;;  %v2129_v20 = vcombine.low %v106_v12, %v110_v13  ;;  %v2124_v6 = vcombine.high %v99_v63, %v103_v1  ;;  %v2126_v7 = vcombine.high %v100_v2, %v104_v3  ;;  %v107_v8 = vld [vmem:[#allocation7 + $0x50] sm:$0xff] }
  0x60   :  { %489 = vmatprep.subr.bf16.mxu0 %v2128_v11  ;;  %v2136_v21 = vcombine.high %v113_v14, %v117_v16  ;;  %532 = vmatprep.subr.bf16.mxu1 %v2130_v15  ;;  %v2138_v22 = vcombine.high %v114_v17, %v118_v18  ;;  %v121_v23 = vld [vmem:[#allocation7 + $0xc0] sm:$0xff]  ;;  %v122_v25 = vld [vmem:[#allocation7 + $0xc8] sm:$0xff]  ;;  %v2135_v27 = vcombine.low %v113_v14, %v117_v16  ;;  %v111_v9 = vld [vmem:[#allocation7 + $0x70] sm:$0xff] }
  0x61   :  { %v125_v24 = vld [vmem:[#allocation7 + $0xe0] sm:$0xff]  ;;  %v126_v26 = vld [vmem:[#allocation7 + $0xe8] sm:$0xff]  ;;  %v2137_v28 = vcombine.low %v114_v17, %v118_v18  ;;  %v2800_v10 = vld [vmem:[#allocation2] sm:$0xff]   ;;  %v2123_v13 = vcombine.low %v99_v63, %v103_v1  ;;  %v2125_v14 = vcombine.low %v100_v2, %v104_v3  ;;  %v2132_v15 = vcombine.high %v107_v8, %v111_v9 }
  0x62   :  { %v2144_v29 = vcombine.high %v121_v23, %v125_v24  ;;  %v2146_v30 = vcombine.high %v122_v25, %v126_v26  ;;  %v129_v31 = vld [vmem:[#allocation7 + $0x100] sm:$0xff]  ;;  %v130_v33 = vld [vmem:[#allocation7 + $0x108] sm:$0xff]  ;;  %v2143_v35 = vcombine.low %v121_v23, %v125_v24  ;;  %v2145_v36 = vcombine.low %v122_v25, %v126_v26  ;;  %v108_v11 = vld [vmem:[#allocation7 + $0x58] sm:$0xff] }
  0x63   :  { %490 = vmatpush1.bf16.msra.mxu0 %v2127_v19  ;;  %533 = vmatpush1.bf16.msra.mxu1 %v2129_v20  ;;  %v133_v32 = vld [vmem:[#allocation7 + $0x120] sm:$0xff]  ;;  %v134_v34 = vld [vmem:[#allocation7 + $0x128] sm:$0xff]  ;;  %v112_v12 = vld [vmem:[#allocation7 + $0x78] sm:$0xff] }
  0x64   :  { %491 = vmatprep.subr.bf16.mxu0 %v2136_v21  ;;  %534 = vmatprep.subr.bf16.mxu1 %v2138_v22  ;;  %v2152_v37 = vcombine.high %v129_v31, %v133_v32  ;;  %v2154_v38 = vcombine.high %v130_v33, %v134_v34  ;;  %v137_v39 = vld [vmem:[#allocation7 + $0x140] sm:$0xff]  ;;  %v138_v41 = vld [vmem:[#allocation7 + $0x148] sm:$0xff]  ;;  %v2151_v43 = vcombine.low %v129_v31, %v133_v32  ;;  %v115_v17 = vld [vmem:[#allocation7 + $0x90] sm:$0xff] }
  0x65   :  { %v141_v40 = vld [vmem:[#allocation7 + $0x160] sm:$0xff]  ;;  %v142_v42 = vld [vmem:[#allocation7 + $0x168] sm:$0xff]  ;;  %v2153_v44 = vcombine.low %v130_v33, %v134_v34  ;;  %v2134_v16 = vcombine.high %v108_v11, %v112_v12  ;;  %v119_v18 = vld [vmem:[#allocation7 + $0xb0] sm:$0xff]  ;;  %v2131_v21 = vcombine.low %v107_v8, %v111_v9  ;;  %v2133_v22 = vcombine.low %v108_v11, %v112_v12 }
  0x66   :  { %v2160_v45 = vcombine.high %v137_v39, %v141_v40  ;;  %v2162_v46 = vcombine.high %v138_v41, %v142_v42  ;;  %v145_v47 = vld [vmem:[#allocation7 + $0x180] sm:$0xff]  ;;  %v146_v49 = vld [vmem:[#allocation7 + $0x188] sm:$0xff]  ;;  %v2159_v51 = vcombine.low %v137_v39, %v141_v40  ;;  %v2161_v52 = vcombine.low %v138_v41, %v142_v42  ;;  %v116_v19 = vld [vmem:[#allocation7 + $0x98] sm:$0xff] }
  0x67   :  { %492 = vmatpush1.bf16.msra.mxu0 %v2135_v27  ;;  %535 = vmatpush1.bf16.msra.mxu1 %v2137_v28  ;;  %v149_v48 = vld [vmem:[#allocation7 + $0x1a0] sm:$0xff]  ;;  %v150_v50 = vld [vmem:[#allocation7 + $0x1a8] sm:$0xff]  ;;  %v120_v20 = vld [vmem:[#allocation7 + $0xb8] sm:$0xff]  ;;  %v2140_v23 = vcombine.high %v115_v17, %v119_v18 }
  0x68   :  { %493 = vmatprep.subr.bf16.mxu0 %v2144_v29  ;;  %536 = vmatprep.subr.bf16.mxu1 %v2146_v30  ;;  %v2168_v53 = vcombine.high %v145_v47, %v149_v48  ;;  %v2170_v54 = vcombine.high %v146_v49, %v150_v50  ;;  %v153_v55 = vld [vmem:[#allocation7 + $0x1c0] sm:$0xff]  ;;  %v154_v57 = vld [vmem:[#allocation7 + $0x1c8] sm:$0xff]  ;;  %v2167_v59 = vcombine.low %v145_v47, %v149_v48  ;;  %v123_v25 = vld [vmem:[#allocation7 + $0xd0] sm:$0xff] }
  0x69   :  { %v157_v56 = vld [vmem:[#allocation7 + $0x1e0] sm:$0xff]  ;;  %v158_v58 = vld [vmem:[#allocation7 + $0x1e8] sm:$0xff]  ;;  %v2169_v60 = vcombine.low %v146_v49, %v150_v50  ;;  %v2142_v24 = vcombine.high %v116_v19, %v120_v20  ;;  %v127_v26 = vld [vmem:[#allocation7 + $0xf0] sm:$0xff]  ;;  %v2139_v29 = vcombine.low %v115_v17, %v119_v18  ;;  %v2141_v30 = vcombine.low %v116_v19, %v120_v20 }
  0x6a   :  { %v2176_v61 = vcombine.high %v153_v55, %v157_v56  ;;  %v2178_v62 = vcombine.high %v154_v57, %v158_v58  ;;  %v2175_v4 = vcombine.low %v153_v55, %v157_v56  ;;  %v2177_v5 = vcombine.low %v154_v57, %v158_v58  ;;  %v124_v27 = vld [vmem:[#allocation7 + $0xd8] sm:$0xff]  ;;  %v131_v33 = vld [vmem:[#allocation7 + $0x110] sm:$0xff]  ;;  %v663_v63 = vld [vmem:[#allocation8 + $0x20] sm:$0xff] }
  0x6b   :  { %494 = vmatpush1.bf16.msra.mxu0 %v2143_v35  ;;  %537 = vmatpush1.bf16.msra.mxu1 %v2145_v36  ;;  %v128_v28 = vld [vmem:[#allocation7 + $0xf8] sm:$0xff]  ;;  %v2148_v31 = vcombine.high %v123_v25, %v127_v26  ;;  %v135_v34 = vld [vmem:[#allocation7 + $0x130] sm:$0xff]  ;;  %v660_v3 = vld [vmem:[#allocation8 + $0x8] sm:$0xff] }
  0x6c   :  { %495 = vmatprep.subr.bf16.mxu0 %v2152_v37  ;;  %538 = vmatprep.subr.bf16.mxu1 %v2154_v38  ;;  %v2150_v32 = vcombine.high %v124_v27, %v128_v28  ;;  %v132_v35 = vld [vmem:[#allocation7 + $0x118] sm:$0xff]  ;;  %v2147_v37 = vcombine.low %v123_v25, %v127_v26  ;;  %v139_v38 = vld [vmem:[#allocation7 + $0x150] sm:$0xff]  ;;  %v2149_v40 = vcombine.low %v124_v27, %v128_v28  ;;  %v671_v8 = vld [vmem:[#allocation8 + $0x60] sm:$0xff] }
  0x6d   :  { %v136_v36 = vld [vmem:[#allocation7 + $0x138] sm:$0xff]  ;;  %v143_v39 = vld [vmem:[#allocation7 + $0x170] sm:$0xff]  ;;  %v2156_v41 = vcombine.high %v131_v33, %v135_v34  ;;  %v668_v12 = vld [vmem:[#allocation8 + $0x48] sm:$0xff] }
  0x6e   :  { %v140_v42 = vld [vmem:[#allocation7 + $0x158] sm:$0xff]  ;;  %v151_v47 = vld [vmem:[#allocation7 + $0x1b0] sm:$0xff]  ;;  %v2157_v48 = vcombine.low %v132_v35, %v136_v36  ;;  %v2164_v49 = vcombine.high %v139_v38, %v143_v39  ;;  %v679_v17 = vld [vmem:[#allocation8 + $0xa0] sm:$0xff] }
  0x6f   :  { %496 = vmatpush1.bf16.msra.mxu0 %v2151_v43  ;;  %539 = vmatpush1.bf16.msra.mxu1 %v2153_v44  ;;  %v144_v43 = vld [vmem:[#allocation7 + $0x178] sm:$0xff]  ;;  %v2158_v44 = vcombine.high %v132_v35, %v136_v36  ;;  %v159_v55 = vld [vmem:[#allocation7 + $0x1f0] sm:$0xff]  ;;  %v676_v20 = vld [vmem:[#allocation8 + $0x88] sm:$0xff] }
  0x70   :  { %497 = vmatprep.subr.bf16.mxu0 %v2160_v45  ;;  %540 = vmatprep.subr.bf16.mxu1 %v2162_v46  ;;  %v2155_v45 = vcombine.low %v131_v33, %v135_v34  ;;  %v147_v46 = vld [vmem:[#allocation7 + $0x190] sm:$0xff]  ;;  %v148_v50 = vld [vmem:[#allocation7 + $0x198] sm:$0xff]  ;;  %v2165_v56 = vcombine.low %v140_v42, %v144_v43  ;;  %v687_v25 = vld [vmem:[#allocation8 + $0xe0] sm:$0xff] }
  0x71   :  { %v2172_v57 = vcombine.high %v147_v46, %v151_v47  ;;  %v156_v58 = vld [vmem:[#allocation7 + $0x1d8] sm:$0xff]  ;;  %v684_v28 = vld [vmem:[#allocation8 + $0xc8] sm:$0xff] }
  0x72   :  { %v692_v35 = vld [vmem:[#allocation8 + $0x108] sm:$0xff] }
  0x73   :  { %498 = vmatpush1.bf16.msra.mxu0 %v2159_v51  ;;  %541 = vmatpush1.bf16.msra.mxu1 %v2161_v52  ;;  %v152_v51 = vld [vmem:[#allocation7 + $0x1b8] sm:$0xff]  ;;  %v2166_v52 = vcombine.high %v140_v42, %v144_v43  ;;  %v696_v36 = vld [vmem:[#allocation8 + $0x128] sm:$0xff] }
  0x74   :  { %499 = vmatprep.subr.bf16.mxu0 %v2168_v53  ;;  %542 = vmatprep.subr.bf16.mxu1 %v2170_v54  ;;  %v2163_v53 = vcombine.low %v139_v38, %v143_v39  ;;  %v155_v54 = vld [vmem:[#allocation7 + $0x1d0] sm:$0xff]  ;;  %v2173_v1 = vcombine.low %v148_v50, %v152_v51  ;;  %v699_v39 = vld [vmem:[#allocation8 + $0x140] sm:$0xff]  ;;  %v700_v43 = vld [vmem:[#allocation8 + $0x148] sm:$0xff] }
  0x75   :  { %v2180_v2 = vcombine.high %v155_v54, %v159_v55 }
  0x77   :  { %500 = vmatpush1.bf16.msra.mxu0 %v2167_v59  ;;  %543 = vmatpush1.bf16.msra.mxu1 %v2169_v60  ;;  %v160_v59 = vld [vmem:[#allocation7 + $0x1f8] sm:$0xff]  ;;  %v2174_v60 = vcombine.high %v148_v50, %v152_v51  ;;  %v708_v51 = vld [vmem:[#allocation8 + $0x188] sm:$0xff] }
  0x78   :  { %501 = vmatprep.subr.bf16.mxu0 %v2176_v61  ;;  %544 = vmatprep.subr.bf16.mxu1 %v2178_v62  ;;  %v2171_v61 = vcombine.low %v147_v46, %v151_v47  ;;  %v659_v62 = vld [vmem:[#allocation8] sm:$0xff]  ;;  %v2181_v9 = vcombine.low %v156_v58, %v160_v59 }
  0x79   :  { %v2185_v11 = vcombine.high %v659_v62, %v663_v63  ;;  %v707_v47 = vld [vmem:[#allocation8 + $0x180] sm:$0xff] }
  0x7b   :  { %502 = vmatpush1.bf16.msra.mxu0 %v2175_v4  ;;  %545 = vmatpush1.bf16.msra.mxu1 %v2177_v5  ;;  %v664_v4 = vld [vmem:[#allocation8 + $0x28] sm:$0xff]  ;;  %v2182_v5 = vcombine.high %v156_v58, %v160_v59 }
  0x7c   :  { %573 = vmatprep.subr.bf16.mxu0 %v2124_v6  ;;  %616 = vmatprep.subr.bf16.mxu1 %v2126_v7  ;;  %v2179_v6 = vcombine.low %v155_v54, %v159_v55  ;;  %v667_v7 = vld [vmem:[#allocation8 + $0x40] sm:$0xff]  ;;  %v2186_v18 = vcombine.low %v660_v3, %v664_v4  ;;  %v716_v59 = vld [vmem:[#allocation8 + $0x1c8] sm:$0xff] }
  0x7d   :  { %v2193_v19 = vcombine.high %v667_v7, %v671_v8  ;;  %v715_v55 = vld [vmem:[#allocation8 + $0x1c0] sm:$0xff] }
  0x7e   :  { %520 = vmatmul.mubr.bf16.vlgmr.msra.gmra.mrb[0].mxu0 %v2800_v10  ;;  %563 = vmatmul.mubr.bf16.vlgmr.msra.gmra.mrb[0].mxu1 %v2800_v10 }
  0x7f   :  { %574 = vmatpush1.bf16.msra.mxu0 %v2123_v13  ;;  %617 = vmatpush1.bf16.msra.mxu1 %v2125_v14  ;;  %v672_v13 = vld [vmem:[#allocation8 + $0x68] sm:$0xff]  ;;  %v2187_v14 = vcombine.high %v660_v3, %v664_v4  ;;  %v662_v4 = vld [vmem:[#allocation8 + $0x18] sm:$0xff] }
  0x80   :  { %575 = vmatprep.subr.bf16.mxu0 %v2132_v15  ;;  %618 = vmatprep.subr.bf16.mxu1 %v2134_v16  ;;  %v2184_v15 = vcombine.low %v659_v62, %v663_v63  ;;  %v675_v16 = vld [vmem:[#allocation8 + $0x80] sm:$0xff]  ;;  %v2194_v26 = vcombine.low %v668_v12, %v672_v13  ;;  %v661_v63 = vld [vmem:[#allocation8 + $0x10] sm:$0xff] }
  0x81   :  { %605 = vmatprep.mubr.bf16.mxu0 %v2684_v0  ;;  %648 = vmatprep.mubr.bf16.mxu1 %v2684_v0  ;;  %v2201_v27 = vcombine.high %v675_v16, %v679_v17 }
  0x83   :  { %576 = vmatpush1.bf16.msra.mxu0 %v2131_v21  ;;  %619 = vmatpush1.bf16.msra.mxu1 %v2133_v22  ;;  %v680_v21 = vld [vmem:[#allocation8 + $0xa8] sm:$0xff]  ;;  %v2195_v22 = vcombine.high %v668_v12, %v672_v13  ;;  %v2810_v12 = vld [vmem:[#allocation5] sm:$0xff]  }
  0x84   :  { %577 = vmatprep.subr.bf16.mxu0 %v2140_v23  ;;  %620 = vmatprep.subr.bf16.mxu1 %v2142_v24  ;;  %v2192_v23 = vcombine.low %v667_v7, %v671_v8  ;;  %v683_v24 = vld [vmem:[#allocation8 + $0xc0] sm:$0xff]  ;;  %v2202_v33 = vcombine.low %v676_v20, %v680_v21  ;;  %v669_v8 = vld [vmem:[#allocation8 + $0x50] sm:$0xff] }
  0x85   :  { %v2209_v34 = vcombine.high %v683_v24, %v687_v25  ;;  %v2208_v38 = vcombine.low %v683_v24, %v687_v25  ;;  %v682_v24 = vld [vmem:[#allocation8 + $0xb8] sm:$0xff] }
  0x87   :  { %578 = vmatpush1.bf16.msra.mxu0 %v2139_v29  ;;  %621 = vmatpush1.bf16.msra.mxu1 %v2141_v30  ;;  %v688_v29 = vld [vmem:[#allocation8 + $0xe8] sm:$0xff]  ;;  %v2203_v30 = vcombine.high %v676_v20, %v680_v21  ;;  %v677_v21 = vld [vmem:[#allocation8 + $0x90] sm:$0xff] }
  0x88   :  { %579 = vmatprep.subr.bf16.mxu0 %v2148_v31  ;;  %622 = vmatprep.subr.bf16.mxu1 %v2150_v32  ;;  %v2200_v31 = vcombine.low %v675_v16, %v679_v17  ;;  %v691_v32 = vld [vmem:[#allocation8 + $0x100] sm:$0xff] }
  0x8b   :  { %580 = vmatpush1.bf16.msra.mxu0 %v2147_v37  ;;  %623 = vmatpush1.bf16.msra.mxu1 %v2149_v40  ;;  %v2211_v37 = vcombine.high %v684_v28, %v688_v29  ;;  %v703_v40 = vld [vmem:[#allocation8 + $0x160] sm:$0xff] }
  0x8c   :  { %581 = vmatprep.subr.bf16.mxu0 %v2156_v41  ;;  %624 = vmatprep.subr.bf16.mxu1 %v2158_v44  ;;  %v2210_v41 = vcombine.low %v684_v28, %v688_v29  ;;  %v704_v44 = vld [vmem:[#allocation8 + $0x168] sm:$0xff]  ;;  %v2225_v50 = vcombine.high %v699_v39, %v703_v40  ;;  %v2224_v54 = vcombine.low %v699_v39, %v703_v40  ;;  %v685_v29 = vld [vmem:[#allocation8 + $0xd0] sm:$0xff]  ;;  %v698_v39 = vld [vmem:[#allocation8 + $0x138] sm:$0xff] }
  0x8f   :  { %582 = vmatpush1.bf16.msra.mxu0 %v2155_v45  ;;  %625 = vmatpush1.bf16.msra.mxu1 %v2157_v48  ;;  %v2219_v45 = vcombine.high %v692_v35, %v696_v36  ;;  %v711_v48 = vld [vmem:[#allocation8 + $0x1a0] sm:$0xff] }
  0x90   :  { %583 = vmatprep.subr.bf16.mxu0 %v2164_v49  ;;  %626 = vmatprep.subr.bf16.mxu1 %v2166_v52  ;;  %v2218_v49 = vcombine.low %v692_v35, %v696_v36  ;;  %v712_v52 = vld [vmem:[#allocation8 + $0x1a8] sm:$0xff]  ;;  %v2233_v58 = vcombine.high %v707_v47, %v711_v48  ;;  %v2232_v62 = vcombine.low %v707_v47, %v711_v48  ;;  %v693_v36 = vld [vmem:[#allocation8 + $0x110] sm:$0xff] }
  0x93   :  { %584 = vmatpush1.bf16.msra.mxu0 %v2163_v53  ;;  %627 = vmatpush1.bf16.msra.mxu1 %v2165_v56  ;;  %v2227_v53 = vcombine.high %v700_v43, %v704_v44  ;;  %v719_v56 = vld [vmem:[#allocation8 + $0x1e0] sm:$0xff] }
  0x94   :  { %585 = vmatprep.subr.bf16.mxu0 %v2172_v57  ;;  %628 = vmatprep.subr.bf16.mxu1 %v2174_v60  ;;  %v2226_v57 = vcombine.low %v700_v43, %v704_v44  ;;  %v720_v60 = vld [vmem:[#allocation8 + $0x1e8] sm:$0xff]  ;;  %v2241_v3 = vcombine.high %v715_v55, %v719_v56  ;;  %v2240_v7 = vcombine.low %v715_v55, %v719_v56  ;;  %v701_v43 = vld [vmem:[#allocation8 + $0x150] sm:$0xff] }
  0x95   :  { %v705_v44 = vld [vmem:[#allocation8 + $0x170] sm:$0xff] }
  0x96   :  { %v2228_v55 = vcombine.low %v701_v43, %v705_v44 }
  0x97   :  { %586 = vmatpush1.bf16.msra.mxu0 %v2171_v61  ;;  %629 = vmatpush1.bf16.msra.mxu1 %v2173_v1  ;;  %v2235_v61 = vcombine.high %v708_v51, %v712_v52  ;;  %v665_v1 = vld [vmem:[#allocation8 + $0x30] sm:$0xff] }
  0x98   :  { %587 = vmatprep.subr.bf16.mxu0 %v2180_v2  ;;  %630 = vmatprep.subr.bf16.mxu1 %v2182_v5  ;;  %v2234_v2 = vcombine.low %v708_v51, %v712_v52  ;;  %v666_v5 = vld [vmem:[#allocation8 + $0x38] sm:$0xff]  ;;  %v2189_v13 = vcombine.high %v661_v63, %v665_v1  ;;  %v2188_v17 = vcombine.low %v661_v63, %v665_v1  ;;  %v709_v51 = vld [vmem:[#allocation8 + $0x190] sm:$0xff] }
  0x99   :  { %v2191_v16 = vcombine.high %v662_v4, %v666_v5  ;;  %v713_v52 = vld [vmem:[#allocation8 + $0x1b0] sm:$0xff] }
  0x9a   :  { %v2236_v63 = vcombine.low %v709_v51, %v713_v52 }
  0x9b   :  { %588 = vmatpush1.bf16.msra.mxu0 %v2179_v6  ;;  %631 = vmatpush1.bf16.msra.mxu1 %v2181_v9  ;;  %v2243_v6 = vcombine.high %v716_v59, %v720_v60  ;;  %v673_v9 = vld [vmem:[#allocation8 + $0x70] sm:$0xff] }
  0x9c   :  { %1049 = vmatprep.subr.bf16.mxu0 %v2185_v11  ;;  %1092 = vmatprep.subr.bf16.mxu1 %v2187_v14  ;;  %v2242_v11 = vcombine.low %v716_v59, %v720_v60  ;;  %v670_v14 = vld [vmem:[#allocation8 + $0x58] sm:$0xff]  ;;  %v2196_v25 = vcombine.low %v669_v8, %v673_v9  ;;  %v717_v59 = vld [vmem:[#allocation8 + $0x1d0] sm:$0xff] }
  0x9d   :  { %v721_v60 = vld [vmem:[#allocation8 + $0x1f0] sm:$0xff] }
  0x9e   :  { %606 = vmatmul.mubr.bf16.vlgmr.msra.gmra.mrb[4].mxu0 %v2800_v10  ;;  %649 = vmatmul.mubr.bf16.vlgmr.msra.gmra.mrb[4].mxu1 %v2800_v10  ;;  %v695_v10 = vld [vmem:[#allocation8 + $0x120] sm:$0xff] }
  0x9f   :  { %1050 = vmatpush1.bf16.msra.mxu0 %v2184_v15  ;;  %1093 = vmatpush1.bf16.msra.mxu1 %v2186_v18  ;;  %v2217_v42 = vcombine.high %v691_v32, %v695_v10  ;;  %v2216_v46 = vcombine.low %v691_v32, %v695_v10  ;;  %v674_v15 = vld [vmem:[#allocation8 + $0x78] sm:$0xff]  ;;  %v2190_v18 = vcombine.low %v662_v4, %v666_v5 }
  0xa0   :  { %1051 = vmatprep.subr.bf16.mxu0 %v2193_v19  ;;  %1094 = vmatprep.subr.bf16.mxu1 %v2195_v22  ;;  %v2197_v19 = vcombine.high %v669_v8, %v673_v9  ;;  %v2199_v20 = vcombine.high %v670_v14, %v674_v15  ;;  %v681_v22 = vld [vmem:[#allocation8 + $0xb0] sm:$0xff]  ;;  %v690_v32 = vld [vmem:[#allocation8 + $0xf8] sm:$0xff]  ;;  %v2244_v4 = vcombine.low %v717_v59, %v721_v60  ;;  %v2456_v8 = vld [vmem:[#allocation10 + $0xc0] sm:$0xff]  }
  0xa1   :  { %1081 = vmatprep.mubr.bf16.mxu0 %v2684_v0  ;;  %1124 = vmatprep.mubr.bf16.mxu1 %v2684_v0  ;;  %v2204_v10 = vcombine.low %v677_v21, %v681_v22  ;;  %v2457_v9 = vld [vmem:[#allocation10 + $0x80] sm:$0xff]  }
  0xa3   :  { %1052 = vmatpush1.bf16.msra.mxu0 %v2192_v23  ;;  %1095 = vmatpush1.bf16.msra.mxu1 %v2194_v26  ;;  %v678_v23 = vld [vmem:[#allocation8 + $0x98] sm:$0xff]  ;;  %v2198_v26 = vcombine.low %v670_v14, %v674_v15  ;;  %v2459_v14 = vld [vmem:[#allocation10 + $0x8] sm:$0xff]  }
  0xa4   :  { %1053 = vmatprep.subr.bf16.mxu0 %v2201_v27  ;;  %1096 = vmatprep.subr.bf16.mxu1 %v2203_v30  ;;  %v2205_v27 = vcombine.high %v677_v21, %v681_v22  ;;  %v2207_v28 = vcombine.high %v678_v23, %v682_v24  ;;  %v689_v30 = vld [vmem:[#allocation8 + $0xf0] sm:$0xff]  ;;  %v2461_v15 = vld [vmem:[#allocation10 + $0x88] sm:$0xff]   ;;  %v2468_v21 = vld [vmem:[#allocation10 + $0xd8] sm:$0xff]  }
  0xa5   :  { %v2212_v40 = vcombine.low %v685_v29, %v689_v30  ;;  %v2467_v22 = vld [vmem:[#allocation10 + $0x18] sm:$0xff]  }
  0xa7   :  { %1054 = vmatpush1.bf16.msra.mxu0 %v2200_v31  ;;  %1097 = vmatpush1.bf16.msra.mxu1 %v2202_v33  ;;  %v686_v31 = vld [vmem:[#allocation8 + $0xd8] sm:$0xff]  ;;  %v2206_v33 = vcombine.low %v678_v23, %v682_v24  ;;  %v2470_v24 = vld [vmem:[#allocation10 + $0x60] sm:$0xff]  }
  0xa8   :  { %1055 = vmatprep.subr.bf16.mxu0 %v2209_v34  ;;  %1098 = vmatprep.subr.bf16.mxu1 %v2211_v37  ;;  %v2213_v34 = vcombine.high %v685_v29, %v689_v30  ;;  %v2215_v35 = vcombine.high %v686_v31, %v690_v32  ;;  %v697_v37 = vld [vmem:[#allocation8 + $0x130] sm:$0xff]  ;;  %v2469_v23 = vld [vmem:[#allocation10 + $0x98] sm:$0xff]   ;;  %v2476_v29 = vld [vmem:[#allocation10 + $0xe8] sm:$0xff]  }
  0xa9   :  { %v2220_v47 = vcombine.low %v693_v36, %v697_v37  ;;  %v2475_v30 = vld [vmem:[#allocation10 + $0x28] sm:$0xff]  }
  0xab   :  { %1056 = vmatpush1.bf16.msra.mxu0 %v2208_v38  ;;  %1099 = vmatpush1.bf16.msra.mxu1 %v2210_v41  ;;  %v694_v38 = vld [vmem:[#allocation8 + $0x118] sm:$0xff]  ;;  %v2214_v41 = vcombine.low %v686_v31, %v690_v32  ;;  %v2477_v31 = vld [vmem:[#allocation10 + $0xa8] sm:$0xff]   ;;  %v2478_v32 = vld [vmem:[#allocation10 + $0x70] sm:$0xff]  }
  0xac   :  { %1057 = vmatprep.subr.bf16.mxu0 %v2217_v42  ;;  %1100 = vmatprep.subr.bf16.mxu1 %v2219_v45  ;;  %v2221_v42 = vcombine.high %v693_v36, %v697_v37  ;;  %v702_v45 = vld [vmem:[#allocation8 + $0x158] sm:$0xff]  ;;  %v2222_v48 = vcombine.low %v694_v38, %v698_v39 }
  0xad   :  { %v2483_v36 = vld [vmem:[#allocation10 + $0x38] sm:$0xff]  }
  0xae   :  { %v2484_v37 = vld [vmem:[#allocation10 + $0xf8] sm:$0xff]  }
  0xaf   :  { %1058 = vmatpush1.bf16.msra.mxu0 %v2216_v46  ;;  %1101 = vmatpush1.bf16.msra.mxu1 %v2218_v49  ;;  %v706_v46 = vld [vmem:[#allocation8 + $0x178] sm:$0xff]  ;;  %v2229_v49 = vcombine.high %v701_v43, %v705_v44 }
  0xb0   :  { %1059 = vmatprep.subr.bf16.mxu0 %v2225_v50  ;;  %1102 = vmatprep.subr.bf16.mxu1 %v2227_v53  ;;  %v2231_v50 = vcombine.high %v702_v45, %v706_v46  ;;  %v710_v53 = vld [vmem:[#allocation8 + $0x198] sm:$0xff]  ;;  %v2230_v56 = vcombine.low %v702_v45, %v706_v46 }
  0xb3   :  { %1060 = vmatpush1.bf16.msra.mxu0 %v2224_v54  ;;  %1103 = vmatpush1.bf16.msra.mxu1 %v2226_v57  ;;  %v714_v54 = vld [vmem:[#allocation8 + $0x1b8] sm:$0xff]  ;;  %v2237_v57 = vcombine.high %v709_v51, %v713_v52 }
  0xb4   :  { %1061 = vmatprep.subr.bf16.mxu0 %v2233_v58  ;;  %1104 = vmatprep.subr.bf16.mxu1 %v2235_v61  ;;  %v2239_v58 = vcombine.high %v710_v53, %v714_v54  ;;  %v718_v61 = vld [vmem:[#allocation8 + $0x1d8] sm:$0xff]  ;;  %v2238_v1 = vcombine.low %v710_v53, %v714_v54 }
  0xb7   :  { %1062 = vmatpush1.bf16.msra.mxu0 %v2232_v62  ;;  %1105 = vmatpush1.bf16.msra.mxu1 %v2234_v2  ;;  %v722_v62 = vld [vmem:[#allocation8 + $0x1f8] sm:$0xff]  ;;  %v2245_v2 = vcombine.high %v717_v59, %v721_v60 }
  0xb8   :  { %1063 = vmatprep.subr.bf16.mxu0 %v2241_v3  ;;  %1106 = vmatprep.subr.bf16.mxu1 %v2243_v6  ;;  %v2247_v3 = vcombine.high %v718_v61, %v722_v62  ;;  %v2246_v5 = vcombine.low %v718_v61, %v722_v62  ;;  %v2454_v6 = vld [vmem:[#allocation10 + $0x40] sm:$0xff]  }
  0xbb   :  { %1064 = vmatpush1.bf16.msra.mxu0 %v2240_v7  ;;  %1107 = vmatpush1.bf16.msra.mxu1 %v2242_v11  ;;  %v2455_v7 = vld [vmem:[#allocation10] sm:$0xff]   ;;  %v2458_v11 = vld [vmem:[#allocation10 + $0x48] sm:$0xff]  }
  0xbc   :  { %1135 = vmatprep.subr.bf16.mxu0 %v2189_v13  ;;  %1178 = vmatprep.subr.bf16.mxu1 %v2191_v16  ;;  %v2460_v13 = vld [vmem:[#allocation10 + $0xc8] sm:$0xff]   ;;  %v2462_v16 = vld [vmem:[#allocation10 + $0x50] sm:$0xff]  }
  0xbe   :  { %1082 = vmatmul.mubr.bf16.vlgmr.msra.gmra.mrb[8].mxu0 %v2810_v12  ;;  %1125 = vmatmul.mubr.bf16.vlgmr.msra.gmra.mrb[8].mxu1 %v2810_v12 }
  0xbf   :  { %1136 = vmatpush1.bf16.msra.mxu0 %v2188_v17  ;;  %1179 = vmatpush1.bf16.msra.mxu1 %v2190_v18  ;;  %v2464_v17 = vld [vmem:[#allocation10 + $0xd0] sm:$0xff]  }
  0xc0   :  { %1137 = vmatprep.subr.bf16.mxu0 %v2197_v19  ;;  %1180 = vmatprep.subr.bf16.mxu1 %v2199_v20  ;;  %v2463_v18 = vld [vmem:[#allocation10 + $0x10] sm:$0xff]   ;;  %v2466_v20 = vld [vmem:[#allocation10 + $0x58] sm:$0xff]  }
  0xc1   :  { %1167 = vmatprep.mubr.bf16.mxu0 %v2684_v0  ;;  %1210 = vmatprep.mubr.bf16.mxu1 %v2684_v0  ;;  %v2223_v0 = vcombine.high %v694_v38, %v698_v39  ;;  %v2465_v19 = vld [vmem:[#allocation10 + $0x90] sm:$0xff]   ;;  %v2485_v38 = vld [vmem:[#allocation10 + $0xb8] sm:$0xff]   ;;  %v2486_v39 = vld [vmem:[#allocation10 + $0x140] sm:$0xff]  }
  0xc3   :  { %1138 = vmatpush1.bf16.msra.mxu0 %v2196_v25  ;;  %1181 = vmatpush1.bf16.msra.mxu1 %v2198_v26  ;;  %v2472_v25 = vld [vmem:[#allocation10 + $0xe0] sm:$0xff]  }
  0xc4   :  { %1139 = vmatprep.subr.bf16.mxu0 %v2205_v27  ;;  %1182 = vmatprep.subr.bf16.mxu1 %v2207_v28  ;;  %v2471_v26 = vld [vmem:[#allocation10 + $0x20] sm:$0xff]   ;;  %v2474_v28 = vld [vmem:[#allocation10 + $0x68] sm:$0xff]  }
  0xc5   :  { %v2473_v27 = vld [vmem:[#allocation10 + $0xa0] sm:$0xff]  }
  0xc7   :  { %1140 = vmatpush1.bf16.msra.mxu0 %v2204_v10  ;;  %1183 = vmatpush1.bf16.msra.mxu1 %v2206_v33  ;;  %v2479_v10 = vld [vmem:[#allocation10 + $0x30] sm:$0xff]  }
  0xc8   :  { %1141 = vmatprep.subr.bf16.mxu0 %v2213_v34  ;;  %1184 = vmatprep.subr.bf16.mxu1 %v2215_v35  ;;  %v2480_v33 = vld [vmem:[#allocation10 + $0xf0] sm:$0xff]   ;;  %v2482_v35 = vld [vmem:[#allocation10 + $0x78] sm:$0xff]  }
  0xc9   :  { %v2481_v34 = vld [vmem:[#allocation10 + $0xb0] sm:$0xff]  }
  0xcb   :  { %1142 = vmatpush1.bf16.msra.mxu0 %v2212_v40  ;;  %1185 = vmatpush1.bf16.msra.mxu1 %v2214_v41  ;;  %v2488_v40 = vld [vmem:[#allocation10 + $0x1c0] sm:$0xff]  }
  0xcc   :  { %1143 = vmatprep.subr.bf16.mxu0 %v2221_v42  ;;  %1186 = vmatprep.subr.bf16.mxu1 %v2223_v0 }
  0xcf   :  { %1144 = vmatpush1.bf16.msra.mxu0 %v2220_v47  ;;  %1187 = vmatpush1.bf16.msra.mxu1 %v2222_v48 }
  0xd0   :  { %1145 = vmatprep.subr.bf16.mxu0 %v2229_v49  ;;  %1188 = vmatprep.subr.bf16.mxu1 %v2231_v50 }
  0xd3   :  { %1146 = vmatpush1.bf16.msra.mxu0 %v2228_v55  ;;  %1189 = vmatpush1.bf16.msra.mxu1 %v2230_v56 }
  0xd4   :  { %1147 = vmatprep.subr.bf16.mxu0 %v2237_v57  ;;  %1190 = vmatprep.subr.bf16.mxu1 %v2239_v58 }
  0xd7   :  { %1148 = vmatpush1.bf16.msra.mxu0 %v2236_v63  ;;  %1191 = vmatpush1.bf16.msra.mxu1 %v2238_v1 }
  0xd8   :  { %1149 = vmatprep.subr.bf16.mxu0 %v2245_v2  ;;  %1192 = vmatprep.subr.bf16.mxu1 %v2247_v3 }
  0xdb   :  { %1150 = vmatpush1.bf16.msra.mxu0 %v2244_v4  ;;  %1193 = vmatpush1.bf16.msra.mxu1 %v2246_v5 }
  0xdc   :  { %2329 = vmatprep.subr.bf16.mxu0 %v2454_v6  ;;  %2351 = vmatprep.subr.bf16.mxu1 %v2456_v8 }
  0xde   :  { %1168 = vmatmul.mubr.bf16.vlgmr.msra.gmra.mrb[12].mxu0 %v2810_v12  ;;  %1211 = vmatmul.mubr.bf16.vlgmr.msra.gmra.mrb[12].mxu1 %v2810_v12 }
  0xdf   :  { %2330 = vmatpush3.bf16.msra.mxu0 %v2455_v7  ;;  %2352 = vmatpush3.bf16.msra.mxu1 %v2457_v9 }
  0xe0   :  { %2331 = vmatprep.subr.bf16.mxu0 %v2458_v11  ;;  %2353 = vmatprep.subr.bf16.mxu1 %v2460_v13 }
  0xe3   :  { %2332 = vmatpush3.bf16.msra.mxu0 %v2459_v14  ;;  %2354 = vmatpush3.bf16.msra.mxu1 %v2461_v15  ;;  %v2487_v14 = vld [vmem:[#allocation10 + $0x100] sm:$0xff]  }
  0xe4   :  { %2333 = vmatprep.subr.bf16.mxu0 %v2462_v16  ;;  %2355 = vmatprep.subr.bf16.mxu1 %v2464_v17  ;;  %v2489_v16 = vld [vmem:[#allocation10 + $0x180] sm:$0xff]   ;;  %v2490_v17 = vld [vmem:[#allocation10 + $0x148] sm:$0xff]  }
  0xe7   :  { %2334 = vmatpush3.bf16.msra.mxu0 %v2463_v18  ;;  %2356 = vmatpush3.bf16.msra.mxu1 %v2465_v19  ;;  %v2492_v18 = vld [vmem:[#allocation10 + $0x1c8] sm:$0xff]  }
  0xe8   :  { %2335 = vmatprep.subr.bf16.mxu0 %v2466_v20  ;;  %2357 = vmatprep.subr.bf16.mxu1 %v2468_v21  ;;  %v2491_v19 = vld [vmem:[#allocation10 + $0x108] sm:$0xff]   ;;  %v2494_v21 = vld [vmem:[#allocation10 + $0x150] sm:$0xff]  }
  0xe9   :  { %v2493_v20 = vld [vmem:[#allocation10 + $0x188] sm:$0xff]  }
  0xeb   :  { %2336 = vmatpush3.bf16.msra.mxu0 %v2467_v22  ;;  %2358 = vmatpush3.bf16.msra.mxu1 %v2469_v23  ;;  %v2496_v22 = vld [vmem:[#allocation10 + $0x1d0] sm:$0xff]  }
  0xec   :  { %2337 = vmatprep.subr.bf16.mxu0 %v2470_v24  ;;  %2359 = vmatprep.subr.bf16.mxu1 %v2472_v25  ;;  %v2495_v23 = vld [vmem:[#allocation10 + $0x110] sm:$0xff]   ;;  %v2498_v25 = vld [vmem:[#allocation10 + $0x158] sm:$0xff]  }
  0xed   :  { %v2497_v24 = vld [vmem:[#allocation10 + $0x190] sm:$0xff]  }
  0xef   :  { %2338 = vmatpush3.bf16.msra.mxu0 %v2471_v26  ;;  %2360 = vmatpush3.bf16.msra.mxu1 %v2473_v27  ;;  %v2500_v26 = vld [vmem:[#allocation10 + $0x1d8] sm:$0xff]  }
  0xf0   :  { %2339 = vmatprep.subr.bf16.mxu0 %v2474_v28  ;;  %2361 = vmatprep.subr.bf16.mxu1 %v2476_v29  ;;  %v2499_v27 = vld [vmem:[#allocation10 + $0x118] sm:$0xff]   ;;  %v2502_v29 = vld [vmem:[#allocation10 + $0x160] sm:$0xff]  }
  0xf1   :  { %v2501_v28 = vld [vmem:[#allocation10 + $0x198] sm:$0xff]  }
  0xf3   :  { %2340 = vmatpush3.bf16.msra.mxu0 %v2475_v30  ;;  %2362 = vmatpush3.bf16.msra.mxu1 %v2477_v31  ;;  %v2504_v30 = vld [vmem:[#allocation10 + $0x1e0] sm:$0xff]  }
  0xf4   :  { %2341 = vmatprep.subr.bf16.mxu0 %v2478_v32  ;;  %2363 = vmatprep.subr.bf16.mxu1 %v2480_v33  ;;  %v2503_v31 = vld [vmem:[#allocation10 + $0x120] sm:$0xff]   ;;  %v2508_v33 = vld [vmem:[#allocation10 + $0x1e8] sm:$0xff]  }
  0xf5   :  { %v2505_v32 = vld [vmem:[#allocation10 + $0x1a0] sm:$0xff]  }
  0xf7   :  { %2342 = vmatpush3.bf16.msra.mxu0 %v2479_v10  ;;  %2364 = vmatpush3.bf16.msra.mxu1 %v2481_v34  ;;  %v2506_v10 = vld [vmem:[#allocation10 + $0x168] sm:$0xff]  }
  0xf8   :  { %2343 = vmatprep.subr.bf16.mxu0 %v2482_v35  ;;  %2365 = vmatprep.subr.bf16.mxu1 %v2484_v37  ;;  %v2507_v34 = vld [vmem:[#allocation10 + $0x128] sm:$0xff]   ;;  %v2512_v37 = vld [vmem:[#allocation10 + $0x1f0] sm:$0xff]  }
  0xf9   :  { %v2509_v35 = vld [vmem:[#allocation10 + $0x1a8] sm:$0xff]  }
  0xfb   :  { %2344 = vmatpush3.bf16.msra.mxu0 %v2483_v36  ;;  %2366 = vmatpush3.bf16.msra.mxu1 %v2485_v38  ;;  %v2510_v36 = vld [vmem:[#allocation10 + $0x170] sm:$0xff]  }
  0xfc   :  { %2373 = vmatprep.subr.bf16.mxu0 %v2486_v39  ;;  %2395 = vmatprep.subr.bf16.mxu1 %v2488_v40  ;;  %v2511_v38 = vld [vmem:[#allocation10 + $0x130] sm:$0xff]   ;;  %v2514_v40 = vld [vmem:[#allocation10 + $0x178] sm:$0xff]  }
  0xfd   :  { %v2513_v39 = vld [vmem:[#allocation10 + $0x1b0] sm:$0xff]  }
 0x151   :  { %v521_v41 = vpop.f32.mrb[0].mxu0  ;;  %v564_v0 = vpop.f32.mrb[0].mxu1 }
 0x152   :  { %v523_v42 = vpop.f32.mrb[1].mxu0  ;;  %v566_v44 = vpop.f32.mrb[1].mxu1 }
 0x153   :  { %v525_v43 = vpop.f32.mrb[2].mxu0  ;;  %v568_v46 = vpop.f32.mrb[2].mxu1 }
 0x154   :  { %v527_v45 = vpop.f32.mrb[3].mxu0  ;;  %v570_v47 = vpop.f32.mrb[3].mxu1 }
 0x171   :  { %v2818_v48 = vpop.f32.mrb[4].mxu0  ;;  %v2822_v50 = vpop.f32.mrb[4].mxu1 }
 0x172   :  { %v2820_v49 = vpop.f32.mrb[5].mxu0  ;;  %v2826_v52 = vpop.f32.mrb[5].mxu1 }
 0x173   :  { %v2824_v51 = vpop.f32.mrb[6].mxu0  ;;  %v2830_v54 = vpop.f32.mrb[6].mxu1 }
 0x174   :  { %v2828_v53 = vpop.f32.mrb[7].mxu0  ;;  %v2832_v55 = vpop.f32.mrb[7].mxu1 }
 0x191   :  { %v1083_v56 = vpop.f32.mrb[8].mxu0  ;;  %v1126_v58 = vpop.f32.mrb[8].mxu1 }
 0x192   :  { %v1221_v57 = vmul.f32 %v1083_v56, %v521_v41  ;;  %v1085_v59 = vpop.f32.mrb[9].mxu0  ;;  %v1223_v60 = vmul.f32 %v1126_v58, %v564_v0  ;;  %v1128_v62 = vpop.f32.mrb[9].mxu1 }
 0x193   :  { %v1222_v61 = vmul.f32 %v1085_v59, %v523_v42  ;;  %v1087_v63 = vpop.f32.mrb[10].mxu0  ;;  %v1224_v1 = vmul.f32 %v1128_v62, %v566_v44  ;;  %v1130_v3 = vpop.f32.mrb[10].mxu1  ;;  %v2516_v42 = vld [vmem:[#allocation10 + $0x1f8] sm:$0xff]  }
 0x194   :  { %v1229_v2 = vmul.f32 %v1087_v63, %v525_v43  ;;  %v1089_v4 = vpop.f32.mrb[11].mxu0  ;;  %v1231_v5 = vmul.f32 %v1130_v3, %v568_v46  ;;  %v1132_v7 = vpop.f32.mrb[11].mxu1  ;;  %v2517_v62 = vld [vmem:[#allocation10 + $0x1b8] sm:$0xff]  }
 0x195   :  { %v1230_v6 = vmul.f32 %v1089_v4, %v527_v45  ;;  %v1232_v9 = vmul.f32 %v1132_v7, %v570_v47  ;;  %v2525_v7 = vld [vmem:[#allocation10 + $0x218] sm:$0xff]  }
 0x196   :  { %v1237_v8 = vpack.c.bf16 %v1229_v2, %v1221_v57  ;;  %v1239_v11 = vpack.c.bf16 %v1231_v5, %v1223_v60  ;;  %v2515_v57 = vld [vmem:[#allocation10 + $0x138] sm:$0xff]   ;;  %v2520_v5 = vld [vmem:[#allocation10 + $0x248] sm:$0xff]  }
 0x197   :  { %v1238_v13 = vpack.c.bf16 %v1230_v6, %v1222_v61  ;;  %v1240_v15 = vpack.c.bf16 %v1232_v9, %v1224_v1  ;;  %v2524_v6 = vld [vmem:[#allocation10 + $0x258] sm:$0xff]   ;;  %v2527_v9 = vld [vmem:[#allocation10 + $0x220] sm:$0xff]  }
 0x199   :  { %1924 = vmatprep.mubr.bf16.mxu0 %v1238_v13  ;;  %1965 = vmatprep.mubr.bf16.mxu1 %v1240_v15  ;;  %v2529_v13 = vld [vmem:[#allocation10 + $0x228] sm:$0xff]   ;;  %v2531_v15 = vld [vmem:[#allocation10 + $0x230] sm:$0xff]  }
 0x19a   :  { %1925 = vmatmul.mubr.bf16.vlgmr.msra.gmra.mrb[16].mxu0 %v1237_v8  ;;  %1966 = vmatmul.mubr.bf16.vlgmr.msra.gmra.mrb[16].mxu1 %v1239_v11  ;;  %v2526_v8 = vld [vmem:[#allocation10 + $0x260] sm:$0xff]   ;;  %v2528_v11 = vld [vmem:[#allocation10 + $0x268] sm:$0xff]  }
 0x19b   :  { %2374 = vmatpush3.bf16.msra.mxu0 %v2487_v14  ;;  %2396 = vmatpush3.bf16.msra.mxu1 %v2489_v16  ;;  %v2530_v14 = vld [vmem:[#allocation10 + $0x270] sm:$0xff]   ;;  %v2533_v16 = vld [vmem:[#allocation10 + $0x238] sm:$0xff]  }
 0x19c   :  { %2375 = vmatprep.subr.bf16.mxu0 %v2490_v17  ;;  %2397 = vmatprep.subr.bf16.mxu1 %v2492_v18  ;;  %v2534_v17 = vld [vmem:[#allocation2] sm:$0xff]  }
 0x19f   :  { %2376 = vmatpush3.bf16.msra.mxu0 %v2491_v19  ;;  %2398 = vmatpush3.bf16.msra.mxu1 %v2493_v20  ;;  %v2248_v20 = vld [vmem:[%s2863_s5] ss:$0 sm:$0xff]  ;;  %s2685_s5 = smov [#allocation11]  }
 0x1a0   :  { %2377 = vmatprep.subr.bf16.mxu0 %v2494_v21  ;;  %2399 = vmatprep.subr.bf16.mxu1 %v2496_v22  ;;  %s2104_s8 = sshll.u32 %s2685_s5, 4  ;;  %s2105_s8 = int_to_ptr.vmem [resolvable:$true] %s2104_s8 }
 0x1a1   :  { %s2645_s23 = scalar_lea.vmem %s2105_s8, 256  ;;  %p2650_p13 = scmp.lt.s32.totalorder %s2105_s8, %s2105_s8 }
 0x1a2   :  { %p2646_p12 = scmp.ne.s32.totalorder %s2105_s8, %s2645_s23  ;;  %p2651_p0 = scmp.lt.s32.totalorder %s2645_s23, %s2645_s23 }
 0x1a3   :  { %2378 = vmatpush3.bf16.msra.mxu0 %v2495_v23  ;;  %2400 = vmatpush3.bf16.msra.mxu1 %v2497_v24 }
 0x1a4   :  { %2379 = vmatprep.subr.bf16.mxu0 %v2498_v25  ;;  %2401 = vmatprep.subr.bf16.mxu1 %v2500_v26  ;;  %p2652_p1 = por %p2651_p0, %p2650_p13 }
 0x1a6   :  { %p2653_p2 = pnand %p2652_p1, %p2646_p12 }
 0x1a7   :  { %2380 = vmatpush3.bf16.msra.mxu0 %v2499_v27  ;;  %2402 = vmatpush3.bf16.msra.mxu1 %v2501_v28 }
 0x1a8   :  { %2381 = vmatprep.subr.bf16.mxu0 %v2502_v29  ;;  %2403 = vmatprep.subr.bf16.mxu1 %v2504_v30 }
 0x1ab   :  { %2382 = vmatpush3.bf16.msra.mxu0 %v2503_v31  ;;  %2404 = vmatpush3.bf16.msra.mxu1 %v2505_v32 }
 0x1ac   :  { %2383 = vmatprep.subr.bf16.mxu0 %v2506_v10  ;;  %2405 = vmatprep.subr.bf16.mxu1 %v2508_v33 }
 0x1af   :  { %2384 = vmatpush3.bf16.msra.mxu0 %v2507_v34  ;;  %2406 = vmatpush3.bf16.msra.mxu1 %v2509_v35 }
 0x1b0   :  { %2385 = vmatprep.subr.bf16.mxu0 %v2510_v36  ;;  %2407 = vmatprep.subr.bf16.mxu1 %v2512_v37 }
 0x1b1   :  { %v1169_v41 = vpop.f32.mrb[12].mxu0  ;;  %v1212_v43 = vpop.f32.mrb[12].mxu1 }
 0x1b2   :  { %v1225_v0 = vmul.f32 %v1169_v41, %v2818_v48  ;;  %v1171_v44 = vpop.f32.mrb[13].mxu0  ;;  %v1227_v45 = vmul.f32 %v1212_v43, %v2822_v50  ;;  %v1214_v47 = vpop.f32.mrb[13].mxu1  ;;  %v2518_v48 = vld [vmem:[#allocation10 + $0x240] sm:$0xff]  }
 0x1b3   :  { %v1226_v46 = vmul.f32 %v1171_v44, %v2820_v49  ;;  %2386 = vmatpush3.bf16.msra.mxu0 %v2511_v38  ;;  %v1173_v56 = vpop.f32.mrb[14].mxu0  ;;  %v1228_v58 = vmul.f32 %v1214_v47, %v2826_v52  ;;  %v1216_v60 = vpop.f32.mrb[14].mxu1  ;;  %2408 = vmatpush3.bf16.msra.mxu1 %v2513_v39  ;;  %v2519_v52 = vld [vmem:[#allocation10 + $0x200] sm:$0xff]  }
 0x1b4   :  { %v1233_v59 = vmul.f32 %v1173_v56, %v2824_v51  ;;  %v1175_v61 = vpop.f32.mrb[15].mxu0  ;;  %2387 = vmatprep.subr.bf16.mxu0 %v2514_v40  ;;  %v1235_v63 = vmul.f32 %v1216_v60, %v2830_v54  ;;  %v1218_v1 = vpop.f32.mrb[15].mxu1  ;;  %2409 = vmatprep.subr.bf16.mxu1 %v2516_v42  ;;  %v2521_v54 = vld [vmem:[#allocation10 + $0x208] sm:$0xff]  }
 0x1b5   :  { %v1234_v50 = vmul.f32 %v1175_v61, %v2828_v53  ;;  %v1236_v2 = vmul.f32 %v1218_v1, %v2832_v55  ;;  %v2522_v53 = vld [vmem:[#allocation10 + $0x250] sm:$0xff]  }
 0x1b6   :  { %v1241_v49 = vpack.c.bf16 %v1233_v59, %v1225_v0  ;;  %v1243_v3 = vpack.c.bf16 %v1235_v63, %v1227_v45  ;;  %v2523_v55 = vld [vmem:[#allocation10 + $0x210] sm:$0xff]  }
 0x1b7   :  { %v1242_v4 = vpack.c.bf16 %v1234_v50, %v1226_v46  ;;  %2388 = vmatpush3.bf16.msra.mxu0 %v2515_v57  ;;  %v1244_v51 = vpack.c.bf16 %v1236_v2, %v1228_v58  ;;  %2410 = vmatpush3.bf16.msra.mxu1 %v2517_v62 }
 0x1b8   :  { %2417 = vmatprep.subr.bf16.mxu0 %v2518_v48 }
 0x1b9   :  { %2006 = vmatprep.mubr.bf16.mxu0 %v1242_v4  ;;  %2047 = vmatprep.mubr.bf16.mxu1 %v1244_v51 }
 0x1ba   :  { %2007 = vmatmul.mubr.bf16.vlgmr.msra.gmra.mrb[20].mxu0 %v1241_v49  ;;  %2048 = vmatmul.mubr.bf16.vlgmr.msra.gmra.mrb[20].mxu1 %v1243_v3 }
 0x1bb   :  { %2418 = vmatpush3.bf16.msra.mxu0 %v2519_v52  ;;  %2088 = vmatprep.mubr.bf16.mxu0 %v2810_v12  ;;  %v2532_v12 = vld [vmem:[#allocation10 + $0x278] sm:$0xff]  }
 0x1bc   :  { %2419 = vmatprep.subr.bf16.mxu0 %v2520_v5 }
 0x1bf   :  { %2420 = vmatpush3.bf16.msra.mxu0 %v2521_v54 }
 0x1c0   :  { %2421 = vmatprep.subr.bf16.mxu0 %v2522_v53 }
 0x1c3   :  { %2422 = vmatpush3.bf16.msra.mxu0 %v2523_v55 }
 0x1c4   :  { %2423 = vmatprep.subr.bf16.mxu0 %v2524_v6 }
 0x1c7   :  { %2424 = vmatpush3.bf16.msra.mxu0 %v2525_v7 }
 0x1c8   :  { %2425 = vmatprep.subr.bf16.mxu0 %v2526_v8 }
 0x1cb   :  { %2426 = vmatpush3.bf16.msra.mxu0 %v2527_v9 }
 0x1cc   :  { %2427 = vmatprep.subr.bf16.mxu0 %v2528_v11 }
 0x1cf   :  { %2428 = vmatpush3.bf16.msra.mxu0 %v2529_v13 }
 0x1d0   :  { %2429 = vmatprep.subr.bf16.mxu0 %v2530_v14 }
 0x1d3   :  { %2430 = vmatpush3.bf16.msra.mxu0 %v2531_v15 }
 0x1d4   :  { %2431 = vmatprep.subr.bf16.mxu0 %v2532_v12 }
 0x1d7   :  { %2432 = vmatpush3.bf16.msra.mxu0 %v2533_v16 }
 0x1da   :  { %2089 = vmatmul.mubr.bf16.vlgmr.msra.gmra.mrb[24].mxu0 %v2534_v17 }
 0x26d   :  { %v2345_v18 = vpop.f32.mrb[16].mxu0  ;;  %v2367_v19 = vpop.f32.mrb[16].mxu1 }
 0x26e   :  { %v2346_v21 = vpop.f32.mrb[17].mxu0  ;;  %v2368_v23 = vpop.f32.mrb[17].mxu1 }
 0x26f   :  { %v2347_v22 = vadd.f32 %v2346_v21, %v2345_v18  ;;  %v2348_v24 = vpop.f32.mrb[18].mxu0  ;;  %v2369_v25 = vadd.f32 %v2368_v23, %v2367_v19  ;;  %v2370_v26 = vpop.f32.mrb[18].mxu1 }
 0x270   :  { %v2349_v27 = vpop.f32.mrb[19].mxu0  ;;  %v2371_v30 = vpop.f32.mrb[19].mxu1 }
 0x271   :  { %v1927_v28 = vadd.f32 %v2347_v22, %v2248_v20  ;;  %v2350_v29 = vadd.f32 %v2349_v27, %v2348_v24  ;;  %v2372_v31 = vadd.f32 %v2371_v30, %v2370_v26 }
 0x273   :  { %v1968_v32 = vadd.f32 %v2369_v25, %v1927_v28  ;;  %v1930_v10 = vadd.f32 %v2350_v29, %v2248_v20 }
 0x275   :  { %v1971_v33 = vadd.f32 %v2372_v31, %v1930_v10 }
 0x28d   :  { %v2389_v34 = vpop.f32.mrb[20].mxu0  ;;  %v2411_v35 = vpop.f32.mrb[20].mxu1 }
 0x28e   :  { %v2390_v36 = vpop.f32.mrb[21].mxu0  ;;  %v2412_v38 = vpop.f32.mrb[21].mxu1 }
 0x28f   :  { %v2391_v37 = vadd.f32 %v2390_v36, %v2389_v34  ;;  %v2392_v39 = vpop.f32.mrb[22].mxu0  ;;  %v2413_v40 = vadd.f32 %v2412_v38, %v2411_v35  ;;  %v2414_v41 = vpop.f32.mrb[22].mxu1 }
 0x290   :  { %v2393_v42 = vpop.f32.mrb[23].mxu0  ;;  %v2415_v44 = vpop.f32.mrb[23].mxu1 }
 0x291   :  { %v2009_v0 = vadd.f32 %v2391_v37, %v1968_v32  ;;  %v2394_v43 = vadd.f32 %v2393_v42, %v2392_v39  ;;  %v2416_v45 = vadd.f32 %v2415_v44, %v2414_v41 }
 0x293   :  { %v2050_v46 = vadd.f32 %v2413_v40, %v2009_v0  ;;  %v2012_v47 = vadd.f32 %v2394_v43, %v1971_v33 }
 0x295   :  { %v2053_v56 = vadd.f32 %v2416_v45, %v2012_v47 }
 0x2ad   :  { %v2433_v57 = vpop.f32.mrb[24].mxu0 }
 0x2ae   :  { %v2434_v58 = vpop.f32.mrb[25].mxu0 }
 0x2af   :  { %v2435_v59 = vadd.f32 %v2434_v58, %v2433_v57  ;;  %v2436_v60 = vpop.f32.mrb[26].mxu0 }
 0x2b0   :  { %v2437_v61 = vpop.f32.mrb[27].mxu0 }
 0x2b1   :  { %v2091_v62 = vadd.f32 %v2435_v59, %v2050_v46  ;;  %v2438_v48 = vadd.f32 %v2437_v61, %v2436_v60 }
 0x2b3   :  { %2097 = vst [vmem:[#allocation11] sm:$0xff] %v2091_v62  ;;  %v2094_v63 = vadd.f32 %v2438_v48, %v2053_v56 }
 0x2b5   :  { %2098 = vst [vmem:[#allocation11 + $0x8] sm:$0xff] %v2094_v63 }
 0x2b6   :  { %2656 = shalt.err (!%p2653_p2)
}
 0x2b7   :  { %s2657_s15 = scalar_lea.hbm %s2864_s6, 256 }
 0x2b8   :  { %p2658_p3 = scmp.ne.s32.totalorder %s2864_s6, %s2657_s15  ;;  %p2661_p4 = scmp.lt.u32.totalorder %s2657_s15, %s2864_s6 }
 0x2ba   :  { %p2663_p5 = pnand %p2661_p4, %p2658_p3 }
 0x2bc   :  { %2666 = shalt.err (!%p2663_p5)
}
 0x2bd   :  { %s2686_s20 = smov 128   ;;  %s2687_s21 = smov 8  }
 0x2be   :  { %2110 = dma.vmem_to_hbm [thread:$0]  %s2105_s8, 256, %s2864_s6, [#allocation4], %s2686_s20, %s2686_s20, %s2687_s21  }
 0x2bf   :  { %2673 = dma.done.wait [#allocation4], 256  }
 0x2c0   :  { %2674 = vsyncadd [#allocation4], 4294967040 }
 0x2c1   :  { %2114 = vsyncpa [#allocation3], 1 }
 0x2c2   :  { %2115 = vsyncpa [#allocation6], 1 }
 0x2c3   :  { %2116 = vsyncpa [#allocation9], 1 }
 0x2c4   :  { %2117 = vsyncpa [#allocation4], 1 }

// kernel: tpu_custom_call.1
= control target key start
LH: loop header
LB: loop body
LE: loop exit
PB: predicated region body
PF: predicated region fallthrough
CT: control target
= control target key end

     0   :  { %11 = vsyncpa [#allocation3], 0  ;;  %s2858_s0 = inlined_call_operand.hbm [shape: bf16[16,128], index: 0, kind: input, shape index: {}]   ;;  %s2859_s1 = inlined_call_operand.hbm [shape: bf16[16,128], index: 1, kind: input, shape index: {}]   ;;  %s2860_s2 = inlined_call_operand.hbm [shape: bf16[128,1024], index: 2, kind: input, shape index: {}]   ;;  %s2861_s3 = inlined_call_operand.hbm [shape: bf16[128,1024], index: 3, kind: input, shape index: {}]   ;;  %s2862_s4 = inlined_call_operand.hbm [shape: bf16[1280,128], index: 4, kind: input, shape index: {}]   ;;  %s2863_s5 = inlined_call_operand.vmem [shape: f32[1,128], index: 5, kind: input, shape index: {}]   ;;  %s2864_s6 = inlined_call_operand.hbm [shape: f32[16,128], index: 6, kind: output, shape index: {}]  }
   0x1   :  { %12 = vsyncpa [#allocation6], 0 }
   0x2   :  { %13 = vsyncpa [#allocation9], 0 }
   0x3   :  { %14 = vsyncpa [#allocation4], 0  ;;  %s2675_s21 = smov [#allocation5]   ;;  %s2535_s25 = scalar_lea.hbm %s2859_s1, 128 }
   0x4   :  { %s32_s22 = sshll.u32 %s2675_s21, 4  ;;  %p2536_p0 = scmp.ne.s32.totalorder %s2859_s1, %s2535_s25  ;;  %s33_s22 = int_to_ptr.vmem [resolvable:$true] %s32_s22 }
   0x5   :  { %p2539_p1 = scmp.lt.u32.totalorder %s2535_s25, %s2859_s1 }
   0x7   :  { %p2541_p2 = pnand %p2539_p1, %p2536_p0 }
   0x9   :  { %2544 = shalt.err (!%p2541_p2)
}
   0xa   :  { %s2545_s30 = scalar_lea.vmem %s33_s22, 128  ;;  %p2550_p4 = scmp.lt.s32.totalorder %s33_s22, %s33_s22 }
   0xb   :  { %p2546_p3 = scmp.ne.s32.totalorder %s33_s22, %s2545_s30  ;;  %p2551_p5 = scmp.lt.s32.totalorder %s2545_s30, %s2545_s30 }
   0xd   :  { %p2552_p6 = por %p2551_p5, %p2550_p4 }
   0xf   :  { %p2553_p7 = pnand %p2552_p6, %p2546_p3 }
  0x11   :  { %2556 = shalt.err (!%p2553_p7)
}
  0x12   :  { %s2676_s7 = smov 64   ;;  %s2677_s8 = smov 4  }
  0x13   :  { %38 = dma.hbm_to_vmem [thread:$0]  %s2859_s1, 128, %s33_s22, [#allocation6], %s2676_s7, %s2676_s7, %s2677_s8  }
  0x14   :  { %s2678_s11 = smov [#allocation8]   ;;  %s2679_s13 = smov [#allocation2]  }
  0x15   :  { %s56_s12 = sshll.u32 %s2678_s11, 4  ;;  %s20_s14 = sshll.u32 %s2679_s13, 4  ;;  %s57_s12 = int_to_ptr.vmem [resolvable:$true] %s56_s12  ;;  %s21_s14 = int_to_ptr.vmem [resolvable:$true] %s20_s14 }
  0x16   :  { %s2557_s17 = scalar_lea.hbm %s2861_s3, 8192 }
  0x17   :  { %p2558_p8 = scmp.ne.s32.totalorder %s2861_s3, %s2557_s17  ;;  %p2561_p9 = scmp.lt.u32.totalorder %s2557_s17, %s2861_s3 }
  0x19   :  { %p2563_p10 = pnand %p2561_p9, %p2558_p8 }
  0x1b   :  { %2566 = shalt.err (!%p2563_p10)
}
  0x1c   :  { %s2567_s1 = scalar_lea.vmem %s57_s12, 8192  ;;  %p2572_p12 = scmp.lt.s32.totalorder %s57_s12, %s57_s12 }
  0x1d   :  { %p2568_p11 = scmp.ne.s32.totalorder %s57_s12, %s2567_s1  ;;  %p2573_p13 = scmp.lt.s32.totalorder %s2567_s1, %s2567_s1 }
  0x1f   :  { %p2574_p0 = por %p2573_p13, %p2572_p12 }
  0x21   :  { %p2575_p1 = pnand %p2574_p0, %p2568_p11 }
  0x23   :  { %2578 = shalt.err (!%p2575_p1)
}
  0x24   :  { %s2680_s22 = smov 512   ;;  %s2681_s23 = smov 32  }
  0x25   :  { %62 = dma.hbm_to_vmem [thread:$0]  %s2861_s3, 8192, %s57_s12, [#allocation9], %s2680_s22, %s2680_s22, %s2681_s23  }
  0x26   :  { %s2579_s28 = scalar_lea.hbm %s2858_s0, 128 }
  0x27   :  { %p2580_p2 = scmp.ne.s32.totalorder %s2858_s0, %s2579_s28  ;;  %p2583_p3 = scmp.lt.u32.totalorder %s2579_s28, %s2858_s0 }
  0x29   :  { %p2585_p4 = pnand %p2583_p3, %p2580_p2 }
  0x2b   :  { %2588 = shalt.err (!%p2585_p4)
}
  0x2c   :  { %s2589_s11 = scalar_lea.vmem %s21_s14, 128  ;;  %p2594_p6 = scmp.lt.s32.totalorder %s21_s14, %s21_s14 }
  0x2d   :  { %p2590_p5 = scmp.ne.s32.totalorder %s21_s14, %s2589_s11  ;;  %p2595_p7 = scmp.lt.s32.totalorder %s2589_s11, %s2589_s11 }
  0x2f   :  { %p2596_p8 = por %p2595_p7, %p2594_p6 }
  0x31   :  { %p2597_p9 = pnand %p2596_p8, %p2590_p5 }
  0x33   :  { %2600 = shalt.err (!%p2597_p9)
}
  0x34   :  { %26 = dma.hbm_to_vmem [thread:$0]  %s2858_s0, 128, %s21_s14, [#allocation3], %s2676_s7, %s2676_s7, %s2677_s8  }
  0x35   :  { %s2682_s13 = smov [#allocation7]   ;;  %s2683_s16 = smov [#allocation10]  }
  0x36   :  { %s44_s15 = sshll.u32 %s2682_s13, 4  ;;  %s68_s17 = sshll.u32 %s2683_s16, 4  ;;  %s45_s15 = int_to_ptr.vmem [resolvable:$true] %s44_s15  ;;  %s69_s17 = int_to_ptr.vmem [resolvable:$true] %s68_s17 }
  0x37   :  { %s2601_s20 = scalar_lea.hbm %s2860_s2, 8192 }
  0x38   :  { %p2602_p10 = scmp.ne.s32.totalorder %s2860_s2, %s2601_s20  ;;  %p2605_p11 = scmp.lt.u32.totalorder %s2601_s20, %s2860_s2 }
  0x3a   :  { %p2607_p12 = pnand %p2605_p11, %p2602_p10 }
  0x3c   :  { %2610 = shalt.err (!%p2607_p12)
}
  0x3d   :  { %s2611_s0 = scalar_lea.vmem %s45_s15, 8192  ;;  %p2616_p0 = scmp.lt.s32.totalorder %s45_s15, %s45_s15 }
  0x3e   :  { %p2612_p13 = scmp.ne.s32.totalorder %s45_s15, %s2611_s0  ;;  %p2617_p1 = scmp.lt.s32.totalorder %s2611_s0, %s2611_s0 }
  0x40   :  { %p2618_p2 = por %p2617_p1, %p2616_p0 }
  0x42   :  { %p2619_p3 = pnand %p2618_p2, %p2612_p13 }
  0x44   :  { %2622 = shalt.err (!%p2619_p3)
}
  0x45   :  { %50 = dma.hbm_to_vmem [thread:$0]  %s2860_s2, 8192, %s45_s15, [#allocation6], %s2680_s22, %s2680_s22, %s2681_s23  }
  0x46   :  { %s2623_s29 = scalar_lea.hbm %s2862_s4, 10240 }
  0x47   :  { %p2624_p4 = scmp.ne.s32.totalorder %s2862_s4, %s2623_s29  ;;  %p2627_p5 = scmp.lt.u32.totalorder %s2623_s29, %s2862_s4 }
  0x49   :  { %p2629_p6 = pnand %p2627_p5, %p2624_p4 }
  0x4b   :  { %2632 = shalt.err (!%p2629_p6)
}
  0x4c   :  { %s2633_s3 = scalar_lea.vmem %s69_s17, 10240  ;;  %p2638_p8 = scmp.lt.s32.totalorder %s69_s17, %s69_s17 }
  0x4d   :  { %p2634_p7 = scmp.ne.s32.totalorder %s69_s17, %s2633_s3  ;;  %p2639_p9 = scmp.lt.s32.totalorder %s2633_s3, %s2633_s3 }
  0x4f   :  { %p2640_p10 = por %p2639_p9, %p2638_p8 }
  0x51   :  { %p2641_p11 = pnand %p2640_p10, %p2634_p7 }
  0x53   :  { %2644 = shalt.err (!%p2641_p11)
}
  0x54   :  { %74 = dma.hbm_to_vmem [thread:$0]  %s2862_s4, 10240, %s69_s17, [#allocation9], %s2676_s7, %s2676_s7, %s2677_s8  }
  0x55   :  { %2667 = dma.done.wait [#allocation3], 128  }
  0x56   :  { %2668 = vsyncadd [#allocation3], 4294967168 }
  0x57   :  { %2669 = dma.done.wait [#allocation6], 8320  }
  0x58   :  { %2670 = vsyncadd [#allocation6], 4294958976 }
  0x59   :  { %2671 = dma.done.wait [#allocation9], 18432  }
  0x5a   :  { %2672 = vsyncadd [#allocation9], 4294948864  ;;  %v2684_v0 = vmov 0   ;;  %v97_v1 = vld [vmem:[#allocation7] sm:$0xff]  ;;  %v98_v3 = vld [vmem:[#allocation7 + $0x8] sm:$0xff] }
  0x5b   :  { %519 = vmatprep.mubr.bf16.mxu0 %v2684_v0  ;;  %562 = vmatprep.mubr.bf16.mxu1 %v2684_v0  ;;  %v101_v2 = vld [vmem:[#allocation7 + $0x20] sm:$0xff]  ;;  %v102_v5 = vld [vmem:[#allocation7 + $0x28] sm:$0xff]  ;;  %v99_v63 = vld [vmem:[#allocation7 + $0x10] sm:$0xff] }
  0x5c   :  { %v2120_v4 = vcombine.high %v97_v1, %v101_v2  ;;  %v2119_v6 = vcombine.low %v97_v1, %v101_v2  ;;  %v105_v7 = vld [vmem:[#allocation7 + $0x40] sm:$0xff]  ;;  %v2122_v9 = vcombine.high %v98_v3, %v102_v5  ;;  %v2121_v10 = vcombine.low %v98_v3, %v102_v5  ;;  %v106_v12 = vld [vmem:[#allocation7 + $0x48] sm:$0xff]  ;;  %v103_v1 = vld [vmem:[#allocation7 + $0x30] sm:$0xff] }
  0x5d   :  { %v109_v8 = vld [vmem:[#allocation7 + $0x60] sm:$0xff]  ;;  %v110_v13 = vld [vmem:[#allocation7 + $0x68] sm:$0xff]  ;;  %v100_v2 = vld [vmem:[#allocation7 + $0x18] sm:$0xff] }
  0x5e   :  { %v2128_v11 = vcombine.high %v105_v7, %v109_v8  ;;  %v113_v14 = vld [vmem:[#allocation7 + $0x80] sm:$0xff]  ;;  %487 = vmatprep.subr.bf16.mxu0 %v2120_v4  ;;  %v2130_v15 = vcombine.high %v106_v12, %v110_v13  ;;  %v114_v17 = vld [vmem:[#allocation7 + $0x88] sm:$0xff]  ;;  %530 = vmatprep.subr.bf16.mxu1 %v2122_v9  ;;  %v2127_v19 = vcombine.low %v105_v7, %v109_v8  ;;  %v104_v3 = vld [vmem:[#allocation7 + $0x38] sm:$0xff] }
  0x5f   :  { %v117_v16 = vld [vmem:[#allocation7 + $0xa0] sm:$0xff]  ;;  %v118_v18 = vld [vmem:[#allocation7 + $0xa8] sm:$0xff]  ;;  %488 = vmatpush1.bf16.msra.mxu0 %v2119_v6  ;;  %531 = vmatpush1.bf16.msra.mxu1 %v2121_v10  ;;  %v2129_v20 = vcombine.low %v106_v12, %v110_v13  ;;  %v2124_v6 = vcombine.high %v99_v63, %v103_v1  ;;  %v2126_v7 = vcombine.high %v100_v2, %v104_v3  ;;  %v107_v8 = vld [vmem:[#allocation7 + $0x50] sm:$0xff] }
  0x60   :  { %489 = vmatprep.subr.bf16.mxu0 %v2128_v11  ;;  %v2136_v21 = vcombine.high %v113_v14, %v117_v16  ;;  %532 = vmatprep.subr.bf16.mxu1 %v2130_v15  ;;  %v2138_v22 = vcombine.high %v114_v17, %v118_v18  ;;  %v121_v23 = vld [vmem:[#allocation7 + $0xc0] sm:$0xff]  ;;  %v122_v25 = vld [vmem:[#allocation7 + $0xc8] sm:$0xff]  ;;  %v2135_v27 = vcombine.low %v113_v14, %v117_v16  ;;  %v111_v9 = vld [vmem:[#allocation7 + $0x70] sm:$0xff] }
  0x61   :  { %v125_v24 = vld [vmem:[#allocation7 + $0xe0] sm:$0xff]  ;;  %v126_v26 = vld [vmem:[#allocation7 + $0xe8] sm:$0xff]  ;;  %v2137_v28 = vcombine.low %v114_v17, %v118_v18  ;;  %v2800_v10 = vld [vmem:[#allocation2] sm:$0xff]   ;;  %v2123_v13 = vcombine.low %v99_v63, %v103_v1  ;;  %v2125_v14 = vcombine.low %v100_v2, %v104_v3  ;;  %v2132_v15 = vcombine.high %v107_v8, %v111_v9 }
  0x62   :  { %v2144_v29 = vcombine.high %v121_v23, %v125_v24  ;;  %v2146_v30 = vcombine.high %v122_v25, %v126_v26  ;;  %v129_v31 = vld [vmem:[#allocation7 + $0x100] sm:$0xff]  ;;  %v130_v33 = vld [vmem:[#allocation7 + $0x108] sm:$0xff]  ;;  %v2143_v35 = vcombine.low %v121_v23, %v125_v24  ;;  %v2145_v36 = vcombine.low %v122_v25, %v126_v26  ;;  %v108_v11 = vld [vmem:[#allocation7 + $0x58] sm:$0xff] }
  0x63   :  { %490 = vmatpush1.bf16.msra.mxu0 %v2127_v19  ;;  %533 = vmatpush1.bf16.msra.mxu1 %v2129_v20  ;;  %v133_v32 = vld [vmem:[#allocation7 + $0x120] sm:$0xff]  ;;  %v134_v34 = vld [vmem:[#allocation7 + $0x128] sm:$0xff]  ;;  %v112_v12 = vld [vmem:[#allocation7 + $0x78] sm:$0xff] }
  0x64   :  { %491 = vmatprep.subr.bf16.mxu0 %v2136_v21  ;;  %534 = vmatprep.subr.bf16.mxu1 %v2138_v22  ;;  %v2152_v37 = vcombine.high %v129_v31, %v133_v32  ;;  %v2154_v38 = vcombine.high %v130_v33, %v134_v34  ;;  %v137_v39 = vld [vmem:[#allocation7 + $0x140] sm:$0xff]  ;;  %v138_v41 = vld [vmem:[#allocation7 + $0x148] sm:$0xff]  ;;  %v2151_v43 = vcombine.low %v129_v31, %v133_v32  ;;  %v115_v17 = vld [vmem:[#allocation7 + $0x90] sm:$0xff] }
  0x65   :  { %v141_v40 = vld [vmem:[#allocation7 + $0x160] sm:$0xff]  ;;  %v142_v42 = vld [vmem:[#allocation7 + $0x168] sm:$0xff]  ;;  %v2153_v44 = vcombine.low %v130_v33, %v134_v34  ;;  %v2134_v16 = vcombine.high %v108_v11, %v112_v12  ;;  %v119_v18 = vld [vmem:[#allocation7 + $0xb0] sm:$0xff]  ;;  %v2131_v21 = vcombine.low %v107_v8, %v111_v9  ;;  %v2133_v22 = vcombine.low %v108_v11, %v112_v12 }
  0x66   :  { %v2160_v45 = vcombine.high %v137_v39, %v141_v40  ;;  %v2162_v46 = vcombine.high %v138_v41, %v142_v42  ;;  %v145_v47 = vld [vmem:[#allocation7 + $0x180] sm:$0xff]  ;;  %v146_v49 = vld [vmem:[#allocation7 + $0x188] sm:$0xff]  ;;  %v2159_v51 = vcombine.low %v137_v39, %v141_v40  ;;  %v2161_v52 = vcombine.low %v138_v41, %v142_v42  ;;  %v116_v19 = vld [vmem:[#allocation7 + $0x98] sm:$0xff] }
  0x67   :  { %492 = vmatpush1.bf16.msra.mxu0 %v2135_v27  ;;  %535 = vmatpush1.bf16.msra.mxu1 %v2137_v28  ;;  %v149_v48 = vld [vmem:[#allocation7 + $0x1a0] sm:$0xff]  ;;  %v150_v50 = vld [vmem:[#allocation7 + $0x1a8] sm:$0xff]  ;;  %v120_v20 = vld [vmem:[#allocation7 + $0xb8] sm:$0xff]  ;;  %v2140_v23 = vcombine.high %v115_v17, %v119_v18 }
  0x68   :  { %493 = vmatprep.subr.bf16.mxu0 %v2144_v29  ;;  %536 = vmatprep.subr.bf16.mxu1 %v2146_v30  ;;  %v2168_v53 = vcombine.high %v145_v47, %v149_v48  ;;  %v2170_v54 = vcombine.high %v146_v49, %v150_v50  ;;  %v153_v55 = vld [vmem:[#allocation7 + $0x1c0] sm:$0xff]  ;;  %v154_v57 = vld [vmem:[#allocation7 + $0x1c8] sm:$0xff]  ;;  %v2167_v59 = vcombine.low %v145_v47, %v149_v48  ;;  %v123_v25 = vld [vmem:[#allocation7 + $0xd0] sm:$0xff] }
  0x69   :  { %v157_v56 = vld [vmem:[#allocation7 + $0x1e0] sm:$0xff]  ;;  %v158_v58 = vld [vmem:[#allocation7 + $0x1e8] sm:$0xff]  ;;  %v2169_v60 = vcombine.low %v146_v49, %v150_v50  ;;  %v2142_v24 = vcombine.high %v116_v19, %v120_v20  ;;  %v127_v26 = vld [vmem:[#allocation7 + $0xf0] sm:$0xff]  ;;  %v2139_v29 = vcombine.low %v115_v17, %v119_v18  ;;  %v2141_v30 = vcombine.low %v116_v19, %v120_v20 }
  0x6a   :  { %v2176_v61 = vcombine.high %v153_v55, %v157_v56  ;;  %v2178_v62 = vcombine.high %v154_v57, %v158_v58  ;;  %v2175_v4 = vcombine.low %v153_v55, %v157_v56  ;;  %v2177_v5 = vcombine.low %v154_v57, %v158_v58  ;;  %v124_v27 = vld [vmem:[#allocation7 + $0xd8] sm:$0xff]  ;;  %v131_v33 = vld [vmem:[#allocation7 + $0x110] sm:$0xff]  ;;  %v663_v63 = vld [vmem:[#allocation8 + $0x20] sm:$0xff] }
  0x6b   :  { %494 = vmatpush1.bf16.msra.mxu0 %v2143_v35  ;;  %537 = vmatpush1.bf16.msra.mxu1 %v2145_v36  ;;  %v128_v28 = vld [vmem:[#allocation7 + $0xf8] sm:$0xff]  ;;  %v2148_v31 = vcombine.high %v123_v25, %v127_v26  ;;  %v135_v34 = vld [vmem:[#allocation7 + $0x130] sm:$0xff]  ;;  %v660_v3 = vld [vmem:[#allocation8 + $0x8] sm:$0xff] }
  0x6c   :  { %495 = vmatprep.subr.bf16.mxu0 %v2152_v37  ;;  %538 = vmatprep.subr.bf16.mxu1 %v2154_v38  ;;  %v2150_v32 = vcombine.high %v124_v27, %v128_v28  ;;  %v132_v35 = vld [vmem:[#allocation7 + $0x118] sm:$0xff]  ;;  %v2147_v37 = vcombine.low %v123_v25, %v127_v26  ;;  %v139_v38 = vld [vmem:[#allocation7 + $0x150] sm:$0xff]  ;;  %v2149_v40 = vcombine.low %v124_v27, %v128_v28  ;;  %v671_v8 = vld [vmem:[#allocation8 + $0x60] sm:$0xff] }
  0x6d   :  { %v136_v36 = vld [vmem:[#allocation7 + $0x138] sm:$0xff]  ;;  %v143_v39 = vld [vmem:[#allocation7 + $0x170] sm:$0xff]  ;;  %v2156_v41 = vcombine.high %v131_v33, %v135_v34  ;;  %v668_v12 = vld [vmem:[#allocation8 + $0x48] sm:$0xff] }
  0x6e   :  { %v140_v42 = vld [vmem:[#allocation7 + $0x158] sm:$0xff]  ;;  %v151_v47 = vld [vmem:[#allocation7 + $0x1b0] sm:$0xff]  ;;  %v2157_v48 = vcombine.low %v132_v35, %v136_v36  ;;  %v2164_v49 = vcombine.high %v139_v38, %v143_v39  ;;  %v679_v17 = vld [vmem:[#allocation8 + $0xa0] sm:$0xff] }
  0x6f   :  { %496 = vmatpush1.bf16.msra.mxu0 %v2151_v43  ;;  %539 = vmatpush1.bf16.msra.mxu1 %v2153_v44  ;;  %v144_v43 = vld [vmem:[#allocation7 + $0x178] sm:$0xff]  ;;  %v2158_v44 = vcombine.high %v132_v35, %v136_v36  ;;  %v159_v55 = vld [vmem:[#allocation7 + $0x1f0] sm:$0xff]  ;;  %v676_v20 = vld [vmem:[#allocation8 + $0x88] sm:$0xff] }
  0x70   :  { %497 = vmatprep.subr.bf16.mxu0 %v2160_v45  ;;  %540 = vmatprep.subr.bf16.mxu1 %v2162_v46  ;;  %v2155_v45 = vcombine.low %v131_v33, %v135_v34  ;;  %v147_v46 = vld [vmem:[#allocation7 + $0x190] sm:$0xff]  ;;  %v148_v50 = vld [vmem:[#allocation7 + $0x198] sm:$0xff]  ;;  %v2165_v56 = vcombine.low %v140_v42, %v144_v43  ;;  %v687_v25 = vld [vmem:[#allocation8 + $0xe0] sm:$0xff] }
  0x71   :  { %v2172_v57 = vcombine.high %v147_v46, %v151_v47  ;;  %v156_v58 = vld [vmem:[#allocation7 + $0x1d8] sm:$0xff]  ;;  %v684_v28 = vld [vmem:[#allocation8 + $0xc8] sm:$0xff] }
  0x72   :  { %v692_v35 = vld [vmem:[#allocation8 + $0x108] sm:$0xff] }
  0x73   :  { %498 = vmatpush1.bf16.msra.mxu0 %v2159_v51  ;;  %541 = vmatpush1.bf16.msra.mxu1 %v2161_v52  ;;  %v152_v51 = vld [vmem:[#allocation7 + $0x1b8] sm:$0xff]  ;;  %v2166_v52 = vcombine.high %v140_v42, %v144_v43  ;;  %v696_v36 = vld [vmem:[#allocation8 + $0x128] sm:$0xff] }
  0x74   :  { %499 = vmatprep.subr.bf16.mxu0 %v2168_v53  ;;  %542 = vmatprep.subr.bf16.mxu1 %v2170_v54  ;;  %v2163_v53 = vcombine.low %v139_v38, %v143_v39  ;;  %v155_v54 = vld [vmem:[#allocation7 + $0x1d0] sm:$0xff]  ;;  %v2173_v1 = vcombine.low %v148_v50, %v152_v51  ;;  %v699_v39 = vld [vmem:[#allocation8 + $0x140] sm:$0xff]  ;;  %v700_v43 = vld [vmem:[#allocation8 + $0x148] sm:$0xff] }
  0x75   :  { %v2180_v2 = vcombine.high %v155_v54, %v159_v55 }
  0x77   :  { %500 = vmatpush1.bf16.msra.mxu0 %v2167_v59  ;;  %543 = vmatpush1.bf16.msra.mxu1 %v2169_v60  ;;  %v160_v59 = vld [vmem:[#allocation7 + $0x1f8] sm:$0xff]  ;;  %v2174_v60 = vcombine.high %v148_v50, %v152_v51  ;;  %v708_v51 = vld [vmem:[#allocation8 + $0x188] sm:$0xff] }
  0x78   :  { %501 = vmatprep.subr.bf16.mxu0 %v2176_v61  ;;  %544 = vmatprep.subr.bf16.mxu1 %v2178_v62  ;;  %v2171_v61 = vcombine.low %v147_v46, %v151_v47  ;;  %v659_v62 = vld [vmem:[#allocation8] sm:$0xff]  ;;  %v2181_v9 = vcombine.low %v156_v58, %v160_v59 }
  0x79   :  { %v2185_v11 = vcombine.high %v659_v62, %v663_v63  ;;  %v707_v47 = vld [vmem:[#allocation8 + $0x180] sm:$0xff] }
  0x7b   :  { %502 = vmatpush1.bf16.msra.mxu0 %v2175_v4  ;;  %545 = vmatpush1.bf16.msra.mxu1 %v2177_v5  ;;  %v664_v4 = vld [vmem:[#allocation8 + $0x28] sm:$0xff]  ;;  %v2182_v5 = vcombine.high %v156_v58, %v160_v59 }
  0x7c   :  { %573 = vmatprep.subr.bf16.mxu0 %v2124_v6  ;;  %616 = vmatprep.subr.bf16.mxu1 %v2126_v7  ;;  %v2179_v6 = vcombine.low %v155_v54, %v159_v55  ;;  %v667_v7 = vld [vmem:[#allocation8 + $0x40] sm:$0xff]  ;;  %v2186_v18 = vcombine.low %v660_v3, %v664_v4  ;;  %v716_v59 = vld [vmem:[#allocation8 + $0x1c8] sm:$0xff] }
  0x7d   :  { %v2193_v19 = vcombine.high %v667_v7, %v671_v8  ;;  %v715_v55 = vld [vmem:[#allocation8 + $0x1c0] sm:$0xff] }
  0x7e   :  { %520 = vmatmul.mubr.bf16.vlgmr.msra.gmra.mrb[0].mxu0 %v2800_v10  ;;  %563 = vmatmul.mubr.bf16.vlgmr.msra.gmra.mrb[0].mxu1 %v2800_v10 }
  0x7f   :  { %574 = vmatpush1.bf16.msra.mxu0 %v2123_v13  ;;  %617 = vmatpush1.bf16.msra.mxu1 %v2125_v14  ;;  %v672_v13 = vld [vmem:[#allocation8 + $0x68] sm:$0xff]  ;;  %v2187_v14 = vcombine.high %v660_v3, %v664_v4  ;;  %v662_v4 = vld [vmem:[#allocation8 + $0x18] sm:$0xff] }
  0x80   :  { %575 = vmatprep.subr.bf16.mxu0 %v2132_v15  ;;  %618 = vmatprep.subr.bf16.mxu1 %v2134_v16  ;;  %v2184_v15 = vcombine.low %v659_v62, %v663_v63  ;;  %v675_v16 = vld [vmem:[#allocation8 + $0x80] sm:$0xff]  ;;  %v2194_v26 = vcombine.low %v668_v12, %v672_v13  ;;  %v661_v63 = vld [vmem:[#allocation8 + $0x10] sm:$0xff] }
  0x81   :  { %605 = vmatprep.mubr.bf16.mxu0 %v2684_v0  ;;  %648 = vmatprep.mubr.bf16.mxu1 %v2684_v0  ;;  %v2201_v27 = vcombine.high %v675_v16, %v679_v17 }
  0x83   :  { %576 = vmatpush1.bf16.msra.mxu0 %v2131_v21  ;;  %619 = vmatpush1.bf16.msra.mxu1 %v2133_v22  ;;  %v680_v21 = vld [vmem:[#allocation8 + $0xa8] sm:$0xff]  ;;  %v2195_v22 = vcombine.high %v668_v12, %v672_v13  ;;  %v2810_v12 = vld [vmem:[#allocation5] sm:$0xff]  }
  0x84   :  { %577 = vmatprep.subr.bf16.mxu0 %v2140_v23  ;;  %620 = vmatprep.subr.bf16.mxu1 %v2142_v24  ;;  %v2192_v23 = vcombine.low %v667_v7, %v671_v8  ;;  %v683_v24 = vld [vmem:[#allocation8 + $0xc0] sm:$0xff]  ;;  %v2202_v33 = vcombine.low %v676_v20, %v680_v21  ;;  %v669_v8 = vld [vmem:[#allocation8 + $0x50] sm:$0xff] }
  0x85   :  { %v2209_v34 = vcombine.high %v683_v24, %v687_v25  ;;  %v2208_v38 = vcombine.low %v683_v24, %v687_v25  ;;  %v682_v24 = vld [vmem:[#allocation8 + $0xb8] sm:$0xff] }
  0x87   :  { %578 = vmatpush1.bf16.msra.mxu0 %v2139_v29  ;;  %621 = vmatpush1.bf16.msra.mxu1 %v2141_v30  ;;  %v688_v29 = vld [vmem:[#allocation8 + $0xe8] sm:$0xff]  ;;  %v2203_v30 = vcombine.high %v676_v20, %v680_v21  ;;  %v677_v21 = vld [vmem:[#allocation8 + $0x90] sm:$0xff] }
  0x88   :  { %579 = vmatprep.subr.bf16.mxu0 %v2148_v31  ;;  %622 = vmatprep.subr.bf16.mxu1 %v2150_v32  ;;  %v2200_v31 = vcombine.low %v675_v16, %v679_v17  ;;  %v691_v32 = vld [vmem:[#allocation8 + $0x100] sm:$0xff] }
  0x8b   :  { %580 = vmatpush1.bf16.msra.mxu0 %v2147_v37  ;;  %623 = vmatpush1.bf16.msra.mxu1 %v2149_v40  ;;  %v2211_v37 = vcombine.high %v684_v28, %v688_v29  ;;  %v703_v40 = vld [vmem:[#allocation8 + $0x160] sm:$0xff] }
  0x8c   :  { %581 = vmatprep.subr.bf16.mxu0 %v2156_v41  ;;  %624 = vmatprep.subr.bf16.mxu1 %v2158_v44  ;;  %v2210_v41 = vcombine.low %v684_v28, %v688_v29  ;;  %v704_v44 = vld [vmem:[#allocation8 + $0x168] sm:$0xff]  ;;  %v2225_v50 = vcombine.high %v699_v39, %v703_v40  ;;  %v2224_v54 = vcombine.low %v699_v39, %v703_v40  ;;  %v685_v29 = vld [vmem:[#allocation8 + $0xd0] sm:$0xff]  ;;  %v698_v39 = vld [vmem:[#allocation8 + $0x138] sm:$0xff] }
  0x8f   :  { %582 = vmatpush1.bf16.msra.mxu0 %v2155_v45  ;;  %625 = vmatpush1.bf16.msra.mxu1 %v2157_v48  ;;  %v2219_v45 = vcombine.high %v692_v35, %v696_v36  ;;  %v711_v48 = vld [vmem:[#allocation8 + $0x1a0] sm:$0xff] }
  0x90   :  { %583 = vmatprep.subr.bf16.mxu0 %v2164_v49  ;;  %626 = vmatprep.subr.bf16.mxu1 %v2166_v52  ;;  %v2218_v49 = vcombine.low %v692_v35, %v696_v36  ;;  %v712_v52 = vld [vmem:[#allocation8 + $0x1a8] sm:$0xff]  ;;  %v2233_v58 = vcombine.high %v707_v47, %v711_v48  ;;  %v2232_v62 = vcombine.low %v707_v47, %v711_v48  ;;  %v693_v36 = vld [vmem:[#allocation8 + $0x110] sm:$0xff] }
  0x93   :  { %584 = vmatpush1.bf16.msra.mxu0 %v2163_v53  ;;  %627 = vmatpush1.bf16.msra.mxu1 %v2165_v56  ;;  %v2227_v53 = vcombine.high %v700_v43, %v704_v44  ;;  %v719_v56 = vld [vmem:[#allocation8 + $0x1e0] sm:$0xff] }
  0x94   :  { %585 = vmatprep.subr.bf16.mxu0 %v2172_v57  ;;  %628 = vmatprep.subr.bf16.mxu1 %v2174_v60  ;;  %v2226_v57 = vcombine.low %v700_v43, %v704_v44  ;;  %v720_v60 = vld [vmem:[#allocation8 + $0x1e8] sm:$0xff]  ;;  %v2241_v3 = vcombine.high %v715_v55, %v719_v56  ;;  %v2240_v7 = vcombine.low %v715_v55, %v719_v56  ;;  %v701_v43 = vld [vmem:[#allocation8 + $0x150] sm:$0xff] }
  0x95   :  { %v705_v44 = vld [vmem:[#allocation8 + $0x170] sm:$0xff] }
  0x96   :  { %v2228_v55 = vcombine.low %v701_v43, %v705_v44 }
  0x97   :  { %586 = vmatpush1.bf16.msra.mxu0 %v2171_v61  ;;  %629 = vmatpush1.bf16.msra.mxu1 %v2173_v1  ;;  %v2235_v61 = vcombine.high %v708_v51, %v712_v52  ;;  %v665_v1 = vld [vmem:[#allocation8 + $0x30] sm:$0xff] }
  0x98   :  { %587 = vmatprep.subr.bf16.mxu0 %v2180_v2  ;;  %630 = vmatprep.subr.bf16.mxu1 %v2182_v5  ;;  %v2234_v2 = vcombine.low %v708_v51, %v712_v52  ;;  %v666_v5 = vld [vmem:[#allocation8 + $0x38] sm:$0xff]  ;;  %v2189_v13 = vcombine.high %v661_v63, %v665_v1  ;;  %v2188_v17 = vcombine.low %v661_v63, %v665_v1  ;;  %v709_v51 = vld [vmem:[#allocation8 + $0x190] sm:$0xff] }
  0x99   :  { %v2191_v16 = vcombine.high %v662_v4, %v666_v5  ;;  %v713_v52 = vld [vmem:[#allocation8 + $0x1b0] sm:$0xff] }
  0x9a   :  { %v2236_v63 = vcombine.low %v709_v51, %v713_v52 }
  0x9b   :  { %588 = vmatpush1.bf16.msra.mxu0 %v2179_v6  ;;  %631 = vmatpush1.bf16.msra.mxu1 %v2181_v9  ;;  %v2243_v6 = vcombine.high %v716_v59, %v720_v60  ;;  %v673_v9 = vld [vmem:[#allocation8 + $0x70] sm:$0xff] }
  0x9c   :  { %1049 = vmatprep.subr.bf16.mxu0 %v2185_v11  ;;  %1092 = vmatprep.subr.bf16.mxu1 %v2187_v14  ;;  %v2242_v11 = vcombine.low %v716_v59, %v720_v60  ;;  %v670_v14 = vld [vmem:[#allocation8 + $0x58] sm:$0xff]  ;;  %v2196_v25 = vcombine.low %v669_v8, %v673_v9  ;;  %v717_v59 = vld [vmem:[#allocation8 + $0x1d0] sm:$0xff] }
  0x9d   :  { %v721_v60 = vld [vmem:[#allocation8 + $0x1f0] sm:$0xff] }
  0x9e   :  { %606 = vmatmul.mubr.bf16.vlgmr.msra.gmra.mrb[4].mxu0 %v2800_v10  ;;  %649 = vmatmul.mubr.bf16.vlgmr.msra.gmra.mrb[4].mxu1 %v2800_v10  ;;  %v695_v10 = vld [vmem:[#allocation8 + $0x120] sm:$0xff] }
  0x9f   :  { %1050 = vmatpush1.bf16.msra.mxu0 %v2184_v15  ;;  %1093 = vmatpush1.bf16.msra.mxu1 %v2186_v18  ;;  %v2217_v42 = vcombine.high %v691_v32, %v695_v10  ;;  %v2216_v46 = vcombine.low %v691_v32, %v695_v10  ;;  %v674_v15 = vld [vmem:[#allocation8 + $0x78] sm:$0xff]  ;;  %v2190_v18 = vcombine.low %v662_v4, %v666_v5 }
  0xa0   :  { %1051 = vmatprep.subr.bf16.mxu0 %v2193_v19  ;;  %1094 = vmatprep.subr.bf16.mxu1 %v2195_v22  ;;  %v2197_v19 = vcombine.high %v669_v8, %v673_v9  ;;  %v2199_v20 = vcombine.high %v670_v14, %v674_v15  ;;  %v681_v22 = vld [vmem:[#allocation8 + $0xb0] sm:$0xff]  ;;  %v690_v32 = vld [vmem:[#allocation8 + $0xf8] sm:$0xff]  ;;  %v2244_v4 = vcombine.low %v717_v59, %v721_v60  ;;  %v2456_v8 = vld [vmem:[#allocation10 + $0xc0] sm:$0xff]  }
  0xa1   :  { %1081 = vmatprep.mubr.bf16.mxu0 %v2684_v0  ;;  %1124 = vmatprep.mubr.bf16.mxu1 %v2684_v0  ;;  %v2204_v10 = vcombine.low %v677_v21, %v681_v22  ;;  %v2457_v9 = vld [vmem:[#allocation10 + $0x80] sm:$0xff]  }
  0xa3   :  { %1052 = vmatpush1.bf16.msra.mxu0 %v2192_v23  ;;  %1095 = vmatpush1.bf16.msra.mxu1 %v2194_v26  ;;  %v678_v23 = vld [vmem:[#allocation8 + $0x98] sm:$0xff]  ;;  %v2198_v26 = vcombine.low %v670_v14, %v674_v15  ;;  %v2459_v14 = vld [vmem:[#allocation10 + $0x8] sm:$0xff]  }
  0xa4   :  { %1053 = vmatprep.subr.bf16.mxu0 %v2201_v27  ;;  %1096 = vmatprep.subr.bf16.mxu1 %v2203_v30  ;;  %v2205_v27 = vcombine.high %v677_v21, %v681_v22  ;;  %v2207_v28 = vcombine.high %v678_v23, %v682_v24  ;;  %v689_v30 = vld [vmem:[#allocation8 + $0xf0] sm:$0xff]  ;;  %v2461_v15 = vld [vmem:[#allocation10 + $0x88] sm:$0xff]   ;;  %v2468_v21 = vld [vmem:[#allocation10 + $0xd8] sm:$0xff]  }
  0xa5   :  { %v2212_v40 = vcombine.low %v685_v29, %v689_v30  ;;  %v2467_v22 = vld [vmem:[#allocation10 + $0x18] sm:$0xff]  }
  0xa7   :  { %1054 = vmatpush1.bf16.msra.mxu0 %v2200_v31  ;;  %1097 = vmatpush1.bf16.msra.mxu1 %v2202_v33  ;;  %v686_v31 = vld [vmem:[#allocation8 + $0xd8] sm:$0xff]  ;;  %v2206_v33 = vcombine.low %v678_v23, %v682_v24  ;;  %v2470_v24 = vld [vmem:[#allocation10 + $0x60] sm:$0xff]  }
  0xa8   :  { %1055 = vmatprep.subr.bf16.mxu0 %v2209_v34  ;;  %1098 = vmatprep.subr.bf16.mxu1 %v2211_v37  ;;  %v2213_v34 = vcombine.high %v685_v29, %v689_v30  ;;  %v2215_v35 = vcombine.high %v686_v31, %v690_v32  ;;  %v697_v37 = vld [vmem:[#allocation8 + $0x130] sm:$0xff]  ;;  %v2469_v23 = vld [vmem:[#allocation10 + $0x98] sm:$0xff]   ;;  %v2476_v29 = vld [vmem:[#allocation10 + $0xe8] sm:$0xff]  }
  0xa9   :  { %v2220_v47 = vcombine.low %v693_v36, %v697_v37  ;;  %v2475_v30 = vld [vmem:[#allocation10 + $0x28] sm:$0xff]  }
  0xab   :  { %1056 = vmatpush1.bf16.msra.mxu0 %v2208_v38  ;;  %1099 = vmatpush1.bf16.msra.mxu1 %v2210_v41  ;;  %v694_v38 = vld [vmem:[#allocation8 + $0x118] sm:$0xff]  ;;  %v2214_v41 = vcombine.low %v686_v31, %v690_v32  ;;  %v2477_v31 = vld [vmem:[#allocation10 + $0xa8] sm:$0xff]   ;;  %v2478_v32 = vld [vmem:[#allocation10 + $0x70] sm:$0xff]  }
  0xac   :  { %1057 = vmatprep.subr.bf16.mxu0 %v2217_v42  ;;  %1100 = vmatprep.subr.bf16.mxu1 %v2219_v45  ;;  %v2221_v42 = vcombine.high %v693_v36, %v697_v37  ;;  %v702_v45 = vld [vmem:[#allocation8 + $0x158] sm:$0xff]  ;;  %v2222_v48 = vcombine.low %v694_v38, %v698_v39 }
  0xad   :  { %v2483_v36 = vld [vmem:[#allocation10 + $0x38] sm:$0xff]  }
  0xae   :  { %v2484_v37 = vld [vmem:[#allocation10 + $0xf8] sm:$0xff]  }
  0xaf   :  { %1058 = vmatpush1.bf16.msra.mxu0 %v2216_v46  ;;  %1101 = vmatpush1.bf16.msra.mxu1 %v2218_v49  ;;  %v706_v46 = vld [vmem:[#allocation8 + $0x178] sm:$0xff]  ;;  %v2229_v49 = vcombine.high %v701_v43, %v705_v44 }
  0xb0   :  { %1059 = vmatprep.subr.bf16.mxu0 %v2225_v50  ;;  %1102 = vmatprep.subr.bf16.mxu1 %v2227_v53  ;;  %v2231_v50 = vcombine.high %v702_v45, %v706_v46  ;;  %v710_v53 = vld [vmem:[#allocation8 + $0x198] sm:$0xff]  ;;  %v2230_v56 = vcombine.low %v702_v45, %v706_v46 }
  0xb3   :  { %1060 = vmatpush1.bf16.msra.mxu0 %v2224_v54  ;;  %1103 = vmatpush1.bf16.msra.mxu1 %v2226_v57  ;;  %v714_v54 = vld [vmem:[#allocation8 + $0x1b8] sm:$0xff]  ;;  %v2237_v57 = vcombine.high %v709_v51, %v713_v52 }
  0xb4   :  { %1061 = vmatprep.subr.bf16.mxu0 %v2233_v58  ;;  %1104 = vmatprep.subr.bf16.mxu1 %v2235_v61  ;;  %v2239_v58 = vcombine.high %v710_v53, %v714_v54  ;;  %v718_v61 = vld [vmem:[#allocation8 + $0x1d8] sm:$0xff]  ;;  %v2238_v1 = vcombine.low %v710_v53, %v714_v54 }
  0xb7   :  { %1062 = vmatpush1.bf16.msra.mxu0 %v2232_v62  ;;  %1105 = vmatpush1.bf16.msra.mxu1 %v2234_v2  ;;  %v722_v62 = vld [vmem:[#allocation8 + $0x1f8] sm:$0xff]  ;;  %v2245_v2 = vcombine.high %v717_v59, %v721_v60 }
  0xb8   :  { %1063 = vmatprep.subr.bf16.mxu0 %v2241_v3  ;;  %1106 = vmatprep.subr.bf16.mxu1 %v2243_v6  ;;  %v2247_v3 = vcombine.high %v718_v61, %v722_v62  ;;  %v2246_v5 = vcombine.low %v718_v61, %v722_v62  ;;  %v2454_v6 = vld [vmem:[#allocation10 + $0x40] sm:$0xff]  }
  0xbb   :  { %1064 = vmatpush1.bf16.msra.mxu0 %v2240_v7  ;;  %1107 = vmatpush1.bf16.msra.mxu1 %v2242_v11  ;;  %v2455_v7 = vld [vmem:[#allocation10] sm:$0xff]   ;;  %v2458_v11 = vld [vmem:[#allocation10 + $0x48] sm:$0xff]  }
  0xbc   :  { %1135 = vmatprep.subr.bf16.mxu0 %v2189_v13  ;;  %1178 = vmatprep.subr.bf16.mxu1 %v2191_v16  ;;  %v2460_v13 = vld [vmem:[#allocation10 + $0xc8] sm:$0xff]   ;;  %v2462_v16 = vld [vmem:[#allocation10 + $0x50] sm:$0xff]  }
  0xbe   :  { %1082 = vmatmul.mubr.bf16.vlgmr.msra.gmra.mrb[8].mxu0 %v2810_v12  ;;  %1125 = vmatmul.mubr.bf16.vlgmr.msra.gmra.mrb[8].mxu1 %v2810_v12 }
  0xbf   :  { %1136 = vmatpush1.bf16.msra.mxu0 %v2188_v17  ;;  %1179 = vmatpush1.bf16.msra.mxu1 %v2190_v18  ;;  %v2464_v17 = vld [vmem:[#allocation10 + $0xd0] sm:$0xff]  }
  0xc0   :  { %1137 = vmatprep.subr.bf16.mxu0 %v2197_v19  ;;  %1180 = vmatprep.subr.bf16.mxu1 %v2199_v20  ;;  %v2463_v18 = vld [vmem:[#allocation10 + $0x10] sm:$0xff]   ;;  %v2466_v20 = vld [vmem:[#allocation10 + $0x58] sm:$0xff]  }
  0xc1   :  { %1167 = vmatprep.mubr.bf16.mxu0 %v2684_v0  ;;  %1210 = vmatprep.mubr.bf16.mxu1 %v2684_v0  ;;  %v2223_v0 = vcombine.high %v694_v38, %v698_v39  ;;  %v2465_v19 = vld [vmem:[#allocation10 + $0x90] sm:$0xff]   ;;  %v2485_v38 = vld [vmem:[#allocation10 + $0xb8] sm:$0xff]   ;;  %v2486_v39 = vld [vmem:[#allocation10 + $0x140] sm:$0xff]  }
  0xc3   :  { %1138 = vmatpush1.bf16.msra.mxu0 %v2196_v25  ;;  %1181 = vmatpush1.bf16.msra.mxu1 %v2198_v26  ;;  %v2472_v25 = vld [vmem:[#allocation10 + $0xe0] sm:$0xff]  }
  0xc4   :  { %1139 = vmatprep.subr.bf16.mxu0 %v2205_v27  ;;  %1182 = vmatprep.subr.bf16.mxu1 %v2207_v28  ;;  %v2471_v26 = vld [vmem:[#allocation10 + $0x20] sm:$0xff]   ;;  %v2474_v28 = vld [vmem:[#allocation10 + $0x68] sm:$0xff]  }
  0xc5   :  { %v2473_v27 = vld [vmem:[#allocation10 + $0xa0] sm:$0xff]  }
  0xc7   :  { %1140 = vmatpush1.bf16.msra.mxu0 %v2204_v10  ;;  %1183 = vmatpush1.bf16.msra.mxu1 %v2206_v33  ;;  %v2479_v10 = vld [vmem:[#allocation10 + $0x30] sm:$0xff]  }
  0xc8   :  { %1141 = vmatprep.subr.bf16.mxu0 %v2213_v34  ;;  %1184 = vmatprep.subr.bf16.mxu1 %v2215_v35  ;;  %v2480_v33 = vld [vmem:[#allocation10 + $0xf0] sm:$0xff]   ;;  %v2482_v35 = vld [vmem:[#allocation10 + $0x78] sm:$0xff]  }
  0xc9   :  { %v2481_v34 = vld [vmem:[#allocation10 + $0xb0] sm:$0xff]  }
  0xcb   :  { %1142 = vmatpush1.bf16.msra.mxu0 %v2212_v40  ;;  %1185 = vmatpush1.bf16.msra.mxu1 %v2214_v41  ;;  %v2488_v40 = vld [vmem:[#allocation10 + $0x1c0] sm:$0xff]  }
  0xcc   :  { %1143 = vmatprep.subr.bf16.mxu0 %v2221_v42  ;;  %1186 = vmatprep.subr.bf16.mxu1 %v2223_v0 }
  0xcf   :  { %1144 = vmatpush1.bf16.msra.mxu0 %v2220_v47  ;;  %1187 = vmatpush1.bf16.msra.mxu1 %v2222_v48 }
  0xd0   :  { %1145 = vmatprep.subr.bf16.mxu0 %v2229_v49  ;;  %1188 = vmatprep.subr.bf16.mxu1 %v2231_v50 }
  0xd3   :  { %1146 = vmatpush1.bf16.msra.mxu0 %v2228_v55  ;;  %1189 = vmatpush1.bf16.msra.mxu1 %v2230_v56 }
  0xd4   :  { %1147 = vmatprep.subr.bf16.mxu0 %v2237_v57  ;;  %1190 = vmatprep.subr.bf16.mxu1 %v2239_v58 }
  0xd7   :  { %1148 = vmatpush1.bf16.msra.mxu0 %v2236_v63  ;;  %1191 = vmatpush1.bf16.msra.mxu1 %v2238_v1 }
  0xd8   :  { %1149 = vmatprep.subr.bf16.mxu0 %v2245_v2  ;;  %1192 = vmatprep.subr.bf16.mxu1 %v2247_v3 }
  0xdb   :  { %1150 = vmatpush1.bf16.msra.mxu0 %v2244_v4  ;;  %1193 = vmatpush1.bf16.msra.mxu1 %v2246_v5 }
  0xdc   :  { %2329 = vmatprep.subr.bf16.mxu0 %v2454_v6  ;;  %2351 = vmatprep.subr.bf16.mxu1 %v2456_v8 }
  0xde   :  { %1168 = vmatmul.mubr.bf16.vlgmr.msra.gmra.mrb[12].mxu0 %v2810_v12  ;;  %1211 = vmatmul.mubr.bf16.vlgmr.msra.gmra.mrb[12].mxu1 %v2810_v12 }
  0xdf   :  { %2330 = vmatpush3.bf16.msra.mxu0 %v2455_v7  ;;  %2352 = vmatpush3.bf16.msra.mxu1 %v2457_v9 }
  0xe0   :  { %2331 = vmatprep.subr.bf16.mxu0 %v2458_v11  ;;  %2353 = vmatprep.subr.bf16.mxu1 %v2460_v13 }
  0xe3   :  { %2332 = vmatpush3.bf16.msra.mxu0 %v2459_v14  ;;  %2354 = vmatpush3.bf16.msra.mxu1 %v2461_v15  ;;  %v2487_v14 = vld [vmem:[#allocation10 + $0x100] sm:$0xff]  }
  0xe4   :  { %2333 = vmatprep.subr.bf16.mxu0 %v2462_v16  ;;  %2355 = vmatprep.subr.bf16.mxu1 %v2464_v17  ;;  %v2489_v16 = vld [vmem:[#allocation10 + $0x180] sm:$0xff]   ;;  %v2490_v17 = vld [vmem:[#allocation10 + $0x148] sm:$0xff]  }
  0xe7   :  { %2334 = vmatpush3.bf16.msra.mxu0 %v2463_v18  ;;  %2356 = vmatpush3.bf16.msra.mxu1 %v2465_v19  ;;  %v2492_v18 = vld [vmem:[#allocation10 + $0x1c8] sm:$0xff]  }
  0xe8   :  { %2335 = vmatprep.subr.bf16.mxu0 %v2466_v20  ;;  %2357 = vmatprep.subr.bf16.mxu1 %v2468_v21  ;;  %v2491_v19 = vld [vmem:[#allocation10 + $0x108] sm:$0xff]   ;;  %v2494_v21 = vld [vmem:[#allocation10 + $0x150] sm:$0xff]  }
  0xe9   :  { %v2493_v20 = vld [vmem:[#allocation10 + $0x188] sm:$0xff]  }
  0xeb   :  { %2336 = vmatpush3.bf16.msra.mxu0 %v2467_v22  ;;  %2358 = vmatpush3.bf16.msra.mxu1 %v2469_v23  ;;  %v2496_v22 = vld [vmem:[#allocation10 + $0x1d0] sm:$0xff]  }
  0xec   :  { %2337 = vmatprep.subr.bf16.mxu0 %v2470_v24  ;;  %2359 = vmatprep.subr.bf16.mxu1 %v2472_v25  ;;  %v2495_v23 = vld [vmem:[#allocation10 + $0x110] sm:$0xff]   ;;  %v2498_v25 = vld [vmem:[#allocation10 + $0x158] sm:$0xff]  }
  0xed   :  { %v2497_v24 = vld [vmem:[#allocation10 + $0x190] sm:$0xff]  }
  0xef   :  { %2338 = vmatpush3.bf16.msra.mxu0 %v2471_v26  ;;  %2360 = vmatpush3.bf16.msra.mxu1 %v2473_v27  ;;  %v2500_v26 = vld [vmem:[#allocation10 + $0x1d8] sm:$0xff]  }
  0xf0   :  { %2339 = vmatprep.subr.bf16.mxu0 %v2474_v28  ;;  %2361 = vmatprep.subr.bf16.mxu1 %v2476_v29  ;;  %v2499_v27 = vld [vmem:[#allocation10 + $0x118] sm:$0xff]   ;;  %v2502_v29 = vld [vmem:[#allocation10 + $0x160] sm:$0xff]  }
  0xf1   :  { %v2501_v28 = vld [vmem:[#allocation10 + $0x198] sm:$0xff]  }
  0xf3   :  { %2340 = vmatpush3.bf16.msra.mxu0 %v2475_v30  ;;  %2362 = vmatpush3.bf16.msra.mxu1 %v2477_v31  ;;  %v2504_v30 = vld [vmem:[#allocation10 + $0x1e0] sm:$0xff]  }
  0xf4   :  { %2341 = vmatprep.subr.bf16.mxu0 %v2478_v32  ;;  %2363 = vmatprep.subr.bf16.mxu1 %v2480_v33  ;;  %v2503_v31 = vld [vmem:[#allocation10 + $0x120] sm:$0xff]   ;;  %v2508_v33 = vld [vmem:[#allocation10 + $0x1e8] sm:$0xff]  }
  0xf5   :  { %v2505_v32 = vld [vmem:[#allocation10 + $0x1a0] sm:$0xff]  }
  0xf7   :  { %2342 = vmatpush3.bf16.msra.mxu0 %v2479_v10  ;;  %2364 = vmatpush3.bf16.msra.mxu1 %v2481_v34  ;;  %v2506_v10 = vld [vmem:[#allocation10 + $0x168] sm:$0xff]  }
  0xf8   :  { %2343 = vmatprep.subr.bf16.mxu0 %v2482_v35  ;;  %2365 = vmatprep.subr.bf16.mxu1 %v2484_v37  ;;  %v2507_v34 = vld [vmem:[#allocation10 + $0x128] sm:$0xff]   ;;  %v2512_v37 = vld [vmem:[#allocation10 + $0x1f0] sm:$0xff]  }
  0xf9   :  { %v2509_v35 = vld [vmem:[#allocation10 + $0x1a8] sm:$0xff]  }
  0xfb   :  { %2344 = vmatpush3.bf16.msra.mxu0 %v2483_v36  ;;  %2366 = vmatpush3.bf16.msra.mxu1 %v2485_v38  ;;  %v2510_v36 = vld [vmem:[#allocation10 + $0x170] sm:$0xff]  }
  0xfc   :  { %2373 = vmatprep.subr.bf16.mxu0 %v2486_v39  ;;  %2395 = vmatprep.subr.bf16.mxu1 %v2488_v40  ;;  %v2511_v38 = vld [vmem:[#allocation10 + $0x130] sm:$0xff]   ;;  %v2514_v40 = vld [vmem:[#allocation10 + $0x178] sm:$0xff]  }
  0xfd   :  { %v2513_v39 = vld [vmem:[#allocation10 + $0x1b0] sm:$0xff]  }
 0x151   :  { %v521_v41 = vpop.f32.mrb[0].mxu0  ;;  %v564_v0 = vpop.f32.mrb[0].mxu1 }
 0x152   :  { %v523_v42 = vpop.f32.mrb[1].mxu0  ;;  %v566_v44 = vpop.f32.mrb[1].mxu1 }
 0x153   :  { %v525_v43 = vpop.f32.mrb[2].mxu0  ;;  %v568_v46 = vpop.f32.mrb[2].mxu1 }
 0x154   :  { %v527_v45 = vpop.f32.mrb[3].mxu0  ;;  %v570_v47 = vpop.f32.mrb[3].mxu1 }
 0x171   :  { %v2818_v48 = vpop.f32.mrb[4].mxu0  ;;  %v2822_v50 = vpop.f32.mrb[4].mxu1 }
 0x172   :  { %v2820_v49 = vpop.f32.mrb[5].mxu0  ;;  %v2826_v52 = vpop.f32.mrb[5].mxu1 }
 0x173   :  { %v2824_v51 = vpop.f32.mrb[6].mxu0  ;;  %v2830_v54 = vpop.f32.mrb[6].mxu1 }
 0x174   :  { %v2828_v53 = vpop.f32.mrb[7].mxu0  ;;  %v2832_v55 = vpop.f32.mrb[7].mxu1 }
 0x191   :  { %v1083_v56 = vpop.f32.mrb[8].mxu0  ;;  %v1126_v58 = vpop.f32.mrb[8].mxu1 }
 0x192   :  { %v1221_v57 = vmul.f32 %v1083_v56, %v521_v41  ;;  %v1085_v59 = vpop.f32.mrb[9].mxu0  ;;  %v1223_v60 = vmul.f32 %v1126_v58, %v564_v0  ;;  %v1128_v62 = vpop.f32.mrb[9].mxu1 }
 0x193   :  { %v1222_v61 = vmul.f32 %v1085_v59, %v523_v42  ;;  %v1087_v63 = vpop.f32.mrb[10].mxu0  ;;  %v1224_v1 = vmul.f32 %v1128_v62, %v566_v44  ;;  %v1130_v3 = vpop.f32.mrb[10].mxu1  ;;  %v2516_v42 = vld [vmem:[#allocation10 + $0x1f8] sm:$0xff]  }
 0x194   :  { %v1229_v2 = vmul.f32 %v1087_v63, %v525_v43  ;;  %v1089_v4 = vpop.f32.mrb[11].mxu0  ;;  %v1231_v5 = vmul.f32 %v1130_v3, %v568_v46  ;;  %v1132_v7 = vpop.f32.mrb[11].mxu1  ;;  %v2517_v62 = vld [vmem:[#allocation10 + $0x1b8] sm:$0xff]  }
 0x195   :  { %v1230_v6 = vmul.f32 %v1089_v4, %v527_v45  ;;  %v1232_v9 = vmul.f32 %v1132_v7, %v570_v47  ;;  %v2525_v7 = vld [vmem:[#allocation10 + $0x218] sm:$0xff]  }
 0x196   :  { %v1237_v8 = vpack.c.bf16 %v1229_v2, %v1221_v57  ;;  %v1239_v11 = vpack.c.bf16 %v1231_v5, %v1223_v60  ;;  %v2515_v57 = vld [vmem:[#allocation10 + $0x138] sm:$0xff]   ;;  %v2520_v5 = vld [vmem:[#allocation10 + $0x248] sm:$0xff]  }
 0x197   :  { %v1238_v13 = vpack.c.bf16 %v1230_v6, %v1222_v61  ;;  %v1240_v15 = vpack.c.bf16 %v1232_v9, %v1224_v1  ;;  %v2524_v6 = vld [vmem:[#allocation10 + $0x258] sm:$0xff]   ;;  %v2527_v9 = vld [vmem:[#allocation10 + $0x220] sm:$0xff]  }
 0x199   :  { %1924 = vmatprep.mubr.bf16.mxu0 %v1238_v13  ;;  %1965 = vmatprep.mubr.bf16.mxu1 %v1240_v15  ;;  %v2529_v13 = vld [vmem:[#allocation10 + $0x228] sm:$0xff]   ;;  %v2531_v15 = vld [vmem:[#allocation10 + $0x230] sm:$0xff]  }
 0x19a   :  { %1925 = vmatmul.mubr.bf16.vlgmr.msra.gmra.mrb[16].mxu0 %v1237_v8  ;;  %1966 = vmatmul.mubr.bf16.vlgmr.msra.gmra.mrb[16].mxu1 %v1239_v11  ;;  %v2526_v8 = vld [vmem:[#allocation10 + $0x260] sm:$0xff]   ;;  %v2528_v11 = vld [vmem:[#allocation10 + $0x268] sm:$0xff]  }
 0x19b   :  { %2374 = vmatpush3.bf16.msra.mxu0 %v2487_v14  ;;  %2396 = vmatpush3.bf16.msra.mxu1 %v2489_v16  ;;  %v2530_v14 = vld [vmem:[#allocation10 + $0x270] sm:$0xff]   ;;  %v2533_v16 = vld [vmem:[#allocation10 + $0x238] sm:$0xff]  }
 0x19c   :  { %2375 = vmatprep.subr.bf16.mxu0 %v2490_v17  ;;  %2397 = vmatprep.subr.bf16.mxu1 %v2492_v18  ;;  %v2534_v17 = vld [vmem:[#allocation2] sm:$0xff]  }
 0x19f   :  { %2376 = vmatpush3.bf16.msra.mxu0 %v2491_v19  ;;  %2398 = vmatpush3.bf16.msra.mxu1 %v2493_v20  ;;  %v2248_v20 = vld [vmem:[%s2863_s5] ss:$0 sm:$0xff]  ;;  %s2685_s5 = smov [#allocation11]  }
 0x1a0   :  { %2377 = vmatprep.subr.bf16.mxu0 %v2494_v21  ;;  %2399 = vmatprep.subr.bf16.mxu1 %v2496_v22  ;;  %s2104_s8 = sshll.u32 %s2685_s5, 4  ;;  %s2105_s8 = int_to_ptr.vmem [resolvable:$true] %s2104_s8 }
 0x1a1   :  { %s2645_s23 = scalar_lea.vmem %s2105_s8, 256  ;;  %p2650_p13 = scmp.lt.s32.totalorder %s2105_s8, %s2105_s8 }
 0x1a2   :  { %p2646_p12 = scmp.ne.s32.totalorder %s2105_s8, %s2645_s23  ;;  %p2651_p0 = scmp.lt.s32.totalorder %s2645_s23, %s2645_s23 }
 0x1a3   :  { %2378 = vmatpush3.bf16.msra.mxu0 %v2495_v23  ;;  %2400 = vmatpush3.bf16.msra.mxu1 %v2497_v24 }
 0x1a4   :  { %2379 = vmatprep.subr.bf16.mxu0 %v2498_v25  ;;  %2401 = vmatprep.subr.bf16.mxu1 %v2500_v26  ;;  %p2652_p1 = por %p2651_p0, %p2650_p13 }
 0x1a6   :  { %p2653_p2 = pnand %p2652_p1, %p2646_p12 }
 0x1a7   :  { %2380 = vmatpush3.bf16.msra.mxu0 %v2499_v27  ;;  %2402 = vmatpush3.bf16.msra.mxu1 %v2501_v28 }
 0x1a8   :  { %2381 = vmatprep.subr.bf16.mxu0 %v2502_v29  ;;  %2403 = vmatprep.subr.bf16.mxu1 %v2504_v30 }
 0x1ab   :  { %2382 = vmatpush3.bf16.msra.mxu0 %v2503_v31  ;;  %2404 = vmatpush3.bf16.msra.mxu1 %v2505_v32 }
 0x1ac   :  { %2383 = vmatprep.subr.bf16.mxu0 %v2506_v10  ;;  %2405 = vmatprep.subr.bf16.mxu1 %v2508_v33 }
 0x1af   :  { %2384 = vmatpush3.bf16.msra.mxu0 %v2507_v34  ;;  %2406 = vmatpush3.bf16.msra.mxu1 %v2509_v35 }
 0x1b0   :  { %2385 = vmatprep.subr.bf16.mxu0 %v2510_v36  ;;  %2407 = vmatprep.subr.bf16.mxu1 %v2512_v37 }
 0x1b1   :  { %v1169_v41 = vpop.f32.mrb[12].mxu0  ;;  %v1212_v43 = vpop.f32.mrb[12].mxu1 }
 0x1b2   :  { %v1225_v0 = vmul.f32 %v1169_v41, %v2818_v48  ;;  %v1171_v44 = vpop.f32.mrb[13].mxu0  ;;  %v1227_v45 = vmul.f32 %v1212_v43, %v2822_v50  ;;  %v1214_v47 = vpop.f32.mrb[13].mxu1  ;;  %v2518_v48 = vld [vmem:[#allocation10 + $0x240] sm:$0xff]  }
 0x1b3   :  { %v1226_v46 = vmul.f32 %v1171_v44, %v2820_v49  ;;  %2386 = vmatpush3.bf16.msra.mxu0 %v2511_v38  ;;  %v1173_v56 = vpop.f32.mrb[14].mxu0  ;;  %v1228_v58 = vmul.f32 %v1214_v47, %v2826_v52  ;;  %v1216_v60 = vpop.f32.mrb[14].mxu1  ;;  %2408 = vmatpush3.bf16.msra.mxu1 %v2513_v39  ;;  %v2519_v52 = vld [vmem:[#allocation10 + $0x200] sm:$0xff]  }
 0x1b4   :  { %v1233_v59 = vmul.f32 %v1173_v56, %v2824_v51  ;;  %v1175_v61 = vpop.f32.mrb[15].mxu0  ;;  %2387 = vmatprep.subr.bf16.mxu0 %v2514_v40  ;;  %v1235_v63 = vmul.f32 %v1216_v60, %v2830_v54  ;;  %v1218_v1 = vpop.f32.mrb[15].mxu1  ;;  %2409 = vmatprep.subr.bf16.mxu1 %v2516_v42  ;;  %v2521_v54 = vld [vmem:[#allocation10 + $0x208] sm:$0xff]  }
 0x1b5   :  { %v1234_v50 = vmul.f32 %v1175_v61, %v2828_v53  ;;  %v1236_v2 = vmul.f32 %v1218_v1, %v2832_v55  ;;  %v2522_v53 = vld [vmem:[#allocation10 + $0x250] sm:$0xff]  }
 0x1b6   :  { %v1241_v49 = vpack.c.bf16 %v1233_v59, %v1225_v0  ;;  %v1243_v3 = vpack.c.bf16 %v1235_v63, %v1227_v45  ;;  %v2523_v55 = vld [vmem:[#allocation10 + $0x210] sm:$0xff]  }
 0x1b7   :  { %v1242_v4 = vpack.c.bf16 %v1234_v50, %v1226_v46  ;;  %2388 = vmatpush3.bf16.msra.mxu0 %v2515_v57  ;;  %v1244_v51 = vpack.c.bf16 %v1236_v2, %v1228_v58  ;;  %2410 = vmatpush3.bf16.msra.mxu1 %v2517_v62 }
 0x1b8   :  { %2417 = vmatprep.subr.bf16.mxu0 %v2518_v48 }
 0x1b9   :  { %2006 = vmatprep.mubr.bf16.mxu0 %v1242_v4  ;;  %2047 = vmatprep.mubr.bf16.mxu1 %v1244_v51 }
 0x1ba   :  { %2007 = vmatmul.mubr.bf16.vlgmr.msra.gmra.mrb[20].mxu0 %v1241_v49  ;;  %2048 = vmatmul.mubr.bf16.vlgmr.msra.gmra.mrb[20].mxu1 %v1243_v3 }
 0x1bb   :  { %2418 = vmatpush3.bf16.msra.mxu0 %v2519_v52  ;;  %2088 = vmatprep.mubr.bf16.mxu0 %v2810_v12  ;;  %v2532_v12 = vld [vmem:[#allocation10 + $0x278] sm:$0xff]  }
 0x1bc   :  { %2419 = vmatprep.subr.bf16.mxu0 %v2520_v5 }
 0x1bf   :  { %2420 = vmatpush3.bf16.msra.mxu0 %v2521_v54 }
 0x1c0   :  { %2421 = vmatprep.subr.bf16.mxu0 %v2522_v53 }
 0x1c3   :  { %2422 = vmatpush3.bf16.msra.mxu0 %v2523_v55 }
 0x1c4   :  { %2423 = vmatprep.subr.bf16.mxu0 %v2524_v6 }
 0x1c7   :  { %2424 = vmatpush3.bf16.msra.mxu0 %v2525_v7 }
 0x1c8   :  { %2425 = vmatprep.subr.bf16.mxu0 %v2526_v8 }
 0x1cb   :  { %2426 = vmatpush3.bf16.msra.mxu0 %v2527_v9 }
 0x1cc   :  { %2427 = vmatprep.subr.bf16.mxu0 %v2528_v11 }
 0x1cf   :  { %2428 = vmatpush3.bf16.msra.mxu0 %v2529_v13 }
 0x1d0   :  { %2429 = vmatprep.subr.bf16.mxu0 %v2530_v14 }
 0x1d3   :  { %2430 = vmatpush3.bf16.msra.mxu0 %v2531_v15 }
 0x1d4   :  { %2431 = vmatprep.subr.bf16.mxu0 %v2532_v12 }
 0x1d7   :  { %2432 = vmatpush3.bf16.msra.mxu0 %v2533_v16 }
 0x1da   :  { %2089 = vmatmul.mubr.bf16.vlgmr.msra.gmra.mrb[24].mxu0 %v2534_v17 }
 0x26d   :  { %v2345_v18 = vpop.f32.mrb[16].mxu0  ;;  %v2367_v19 = vpop.f32.mrb[16].mxu1 }
 0x26e   :  { %v2346_v21 = vpop.f32.mrb[17].mxu0  ;;  %v2368_v23 = vpop.f32.mrb[17].mxu1 }
 0x26f   :  { %v2347_v22 = vadd.f32 %v2346_v21, %v2345_v18  ;;  %v2348_v24 = vpop.f32.mrb[18].mxu0  ;;  %v2369_v25 = vadd.f32 %v2368_v23, %v2367_v19  ;;  %v2370_v26 = vpop.f32.mrb[18].mxu1 }
 0x270   :  { %v2349_v27 = vpop.f32.mrb[19].mxu0  ;;  %v2371_v30 = vpop.f32.mrb[19].mxu1 }
 0x271   :  { %v1927_v28 = vadd.f32 %v2347_v22, %v2248_v20  ;;  %v2350_v29 = vadd.f32 %v2349_v27, %v2348_v24  ;;  %v2372_v31 = vadd.f32 %v2371_v30, %v2370_v26 }
 0x273   :  { %v1968_v32 = vadd.f32 %v2369_v25, %v1927_v28  ;;  %v1930_v10 = vadd.f32 %v2350_v29, %v2248_v20 }
 0x275   :  { %v1971_v33 = vadd.f32 %v2372_v31, %v1930_v10 }
 0x28d   :  { %v2389_v34 = vpop.f32.mrb[20].mxu0  ;;  %v2411_v35 = vpop.f32.mrb[20].mxu1 }
 0x28e   :  { %v2390_v36 = vpop.f32.mrb[21].mxu0  ;;  %v2412_v38 = vpop.f32.mrb[21].mxu1 }
 0x28f   :  { %v2391_v37 = vadd.f32 %v2390_v36, %v2389_v34  ;;  %v2392_v39 = vpop.f32.mrb[22].mxu0  ;;  %v2413_v40 = vadd.f32 %v2412_v38, %v2411_v35  ;;  %v2414_v41 = vpop.f32.mrb[22].mxu1 }
 0x290   :  { %v2393_v42 = vpop.f32.mrb[23].mxu0  ;;  %v2415_v44 = vpop.f32.mrb[23].mxu1 }
 0x291   :  { %v2009_v0 = vadd.f32 %v2391_v37, %v1968_v32  ;;  %v2394_v43 = vadd.f32 %v2393_v42, %v2392_v39  ;;  %v2416_v45 = vadd.f32 %v2415_v44, %v2414_v41 }
 0x293   :  { %v2050_v46 = vadd.f32 %v2413_v40, %v2009_v0  ;;  %v2012_v47 = vadd.f32 %v2394_v43, %v1971_v33 }
 0x295   :  { %v2053_v56 = vadd.f32 %v2416_v45, %v2012_v47 }
 0x2ad   :  { %v2433_v57 = vpop.f32.mrb[24].mxu0 }
 0x2ae   :  { %v2434_v58 = vpop.f32.mrb[25].mxu0 }
 0x2af   :  { %v2435_v59 = vadd.f32 %v2434_v58, %v2433_v57  ;;  %v2436_v60 = vpop.f32.mrb[26].mxu0 }
 0x2b0   :  { %v2437_v61 = vpop.f32.mrb[27].mxu0 }
 0x2b1   :  { %v2091_v62 = vadd.f32 %v2435_v59, %v2050_v46  ;;  %v2438_v48 = vadd.f32 %v2437_v61, %v2436_v60 }
 0x2b3   :  { %2097 = vst [vmem:[#allocation11] sm:$0xff] %v2091_v62  ;;  %v2094_v63 = vadd.f32 %v2438_v48, %v2053_v56 }
 0x2b5   :  { %2098 = vst [vmem:[#allocation11 + $0x8] sm:$0xff] %v2094_v63 }
 0x2b6   :  { %2656 = shalt.err (!%p2653_p2)
}
 0x2b7   :  { %s2657_s15 = scalar_lea.hbm %s2864_s6, 256 }
 0x2b8   :  { %p2658_p3 = scmp.ne.s32.totalorder %s2864_s6, %s2657_s15  ;;  %p2661_p4 = scmp.lt.u32.totalorder %s2657_s15, %s2864_s6 }
 0x2ba   :  { %p2663_p5 = pnand %p2661_p4, %p2658_p3 }
 0x2bc   :  { %2666 = shalt.err (!%p2663_p5)
}
 0x2bd   :  { %s2686_s20 = smov 128   ;;  %s2687_s21 = smov 8  }
 0x2be   :  { %2110 = dma.vmem_to_hbm [thread:$0]  %s2105_s8, 256, %s2864_s6, [#allocation4], %s2686_s20, %s2686_s20, %s2687_s21  }
 0x2bf   :  { %2673 = dma.done.wait [#allocation4], 256  }
 0x2c0   :  { %2674 = vsyncadd [#allocation4], 4294967040 }
 0x2c1   :  { %2114 = vsyncpa [#allocation3], 1 }
 0x2c2   :  { %2115 = vsyncpa [#allocation6], 1 }
 0x2c3   :  { %2116 = vsyncpa [#allocation9], 1 }
 0x2c4   :  { %2117 = vsyncpa [#allocation4], 1 }

</bundles_post_ra>
